<compile_context>
chip_gen: v6e
topology: v6e:2x2x1
jax: 0.10.0
libtpu: 0.0.40
codegen_flags: <defaults>
</compile_context>

<pallas_src>
import jax
import jax.numpy as jnp
from jax import lax
from jax.experimental import pallas as pl
from jax.experimental.pallas import tpu as pltpu

BF16 = jnp.bfloat16
F32 = jnp.float32
_CS_W = 128                     # lane width used for the cluster-size accumulator matmul
_VMEM_LIMIT = 64 * 1024 * 1024  # raised from 32 MiB; fits v7x physical VMEM


def _round_up(x, m):
    return ((x + m - 1) // m) * m


# ---------------------------------------------------------------------------
# K1: per-row-tile feature transform   xw_s = inv_r * (X @ W_enc)   (row-parallel)
# ---------------------------------------------------------------------------
def _feat_transform_kernel(x_ref, invr_ref, w_ref, xw_ref):
    xw = jnp.dot(x_ref[...].astype(BF16), w_ref[...].astype(BF16),
                 preferred_element_type=F32)
    # keep the D^-1/2 scaling in f32, cast to bf16 only for the next MXU stage
    xw_ref[...] = (invr_ref[...] * xw).astype(BF16)


# ---------------------------------------------------------------------------
# K2: row-tiled aggregation + pooling reduction + coarse-graph decode
#     (reduction over row tiles -> "arbitrary"; coarse decode on the last step)
# ---------------------------------------------------------------------------
def _aggregate_pool_decode_kernel(a_ref, p_ref, invr_ref, xw_ref,
                                  eb_ref, dw_ref, db_ref,
                                  xd_ref,
                                  xc_acc, ac_acc, cs_acc):
    i = pl.program_id(0)
    tm = a_ref.shape[0]

    @pl.when(i == 0)
    def _():
        xc_acc[...] = jnp.zeros_like(xc_acc)
        ac_acc[...] = jnp.zeros_like(ac_acc)
        cs_acc[...] = jnp.zeros_like(cs_acc)

    a_bf = a_ref[...]                                    # (TM, Np) bf16, binary + self-loops

    # encoder aggregation with the symmetric normalization folded into the feature side
    h = jnp.dot(a_bf, xw_ref[...], preferred_element_type=F32)          # (TM, Hp)
    h = jnp.maximum(invr_ref[...] * h + eb_ref[...], 0.0)

    # pool: contract over the node axis of this strip (no explicit transpose of P)
    row_off = pl.multiple_of(i * tm, tm)
    p_strip = p_ref[pl.ds(row_off, tm), :]                               # (TM, Ncp) bf16
    dn = (((0,), (0,)), ((), ()))
    xc_acc[...] += lax.dot_general(p_strip, h.astype(BF16), dn,
                                   preferred_element_type=F32)           # (Ncp, Hp)
    ap = jnp.dot(a_bf, p_ref[...], preferred_element_type=F32)           # (TM, Ncp)
    ac_acc[...] += lax.dot_general(p_strip, ap.astype(BF16), dn,
                                   preferred_element_type=F32)           # (Ncp, Ncp)
    cs_acc[...] += lax.dot_general(p_strip, jnp.ones((tm, _CS_W), BF16), dn,
                                   preferred_element_type=F32)           # cluster sizes

    @pl.when(i == pl.num_programs(0) - 1)
    def _():
        # cluster-mean features; empty / padded clusters clamped to size 1 -> zero features
        csize = jnp.maximum(cs_acc[:, 0:1], 1.0)                          # (Ncp, 1)
        x_c = xc_acc[...] * pl.reciprocal(csize, approx=True)             # (Ncp, Hp)

        # coarse graph: binarize P^T A P, force unit self-loops, fold normalization
        a_c = ac_acc[...]
        ncp = a_c.shape[0]
        r = lax.broadcasted_iota(jnp.int32, (ncp, ncp), 0)
        c = lax.broadcasted_iota(jnp.int32, (ncp, ncp), 1)
        eye = (r == c).astype(F32)
        a_c_bin = jnp.where(a_c > 0.0, 1.0, 0.0) * (1.0 - eye) + eye
        inv_rc = lax.rsqrt(jnp.sum(a_c_bin, axis=1, keepdims=True))       # (Ncp, 1), >= 1

        # decoder GCN on the coarse graph (tiny: Ncp x Ncp / Ncp x Fp)
        xcw = jnp.dot(x_c.astype(BF16), dw_ref[...].astype(BF16),
                      preferred_element_type=F32)
        x_d = inv_rc * jnp.dot(a_c_bin.astype(BF16), (inv_rc * xcw).astype(BF16),
                               preferred_element_type=F32) + db_ref[...]
        xd_ref[...] = x_d


# ---------------------------------------------------------------------------
# K3: unpool   x_rec = P @ x_d   (row-parallel, lane-dense store)
# ---------------------------------------------------------------------------
def _unpool_kernel(p_ref, xd_ref, o_ref):
    o_ref[...] = jnp.dot(p_ref[...], xd_ref[...].astype(BF16),
                         preferred_element_type=F32).astype(o_ref.dtype)


# ---------------------------------------------------------------------------
# Model (parameters + forward), mirroring CMGAutoencoder.forward
# ---------------------------------------------------------------------------
def init_params(key, num_features, hidden):
    k1, k2, k3, k4 = jax.random.split(key, 4)

    def glorot(k, shape):
        lim = jnp.sqrt(6.0 / (shape[0] + shape[1]))
        return jax.random.uniform(k, shape, jnp.float32, -lim, lim)

    return {
        "enc_w": glorot(k1, (num_features, hidden)),   # GCNConv(F, 64).lin.weight^T
        "enc_b": jax.random.normal(k2, (1, hidden), jnp.float32) * 0.01,
        "dec_w": glorot(k3, (hidden, num_features)),   # GCNConv(64, F).lin.weight^T
        "dec_b": jax.random.normal(k4, (1, num_features), jnp.float32) * 0.01,
    }


def cmg_autoencoder_forward(params, x, edge_index, batch, P, *, tm=128):
    """x: [N, F] node features; edge_index: [2, E]; batch: [N]; P: [N, Nc]."""
    del batch  # single-graph case; only threaded through in the reference module
    n, f_in = x.shape
    nc = P.shape[1]
    hidden = params["enc_w"].shape[1]

    tm = 128 if n >= 128 else _round_up(n, 8)
    np_ = _round_up(n, tm)
    nt = np_ // tm
    ncp = _round_up(max(nc, 128), 128)     # lane-pad clusters
    fp = _round_up(max(f_in, 128), 128)    # lane-pad feature dim
    hp = _round_up(max(hidden, 128), 128)  # lane-pad hidden dim

    # --- wrapper glue: dense binary adjacency with self-loops (bf16-exact), degrees ---
    src, dst = edge_index[0], edge_index[1]
    a = jnp.zeros((np_, np_), jnp.float32)
    a = a.at[src, dst].set(1.0)
    a = a.at[dst, src].set(1.0)
    diag = jnp.arange(n)
    a = a.at[diag, diag].set(1.0)                              # self-loops on real nodes
    deg = jnp.sum(a, axis=1)
    inv_r = lax.rsqrt(jnp.maximum(deg, 1.0)).reshape(np_, 1)   # f32 D^-1/2 (clamped pad rows)
    a_bf = a.astype(BF16)                                      # 0/1 exact in bf16

    # --- exact zero padding of operands (no-op for real rows/cols) ---
    x_p = jnp.pad(x, ((0, np_ - n), (0, fp - f_in)))
    p_bf = jnp.pad(P, ((0, np_ - n), (0, ncp - nc))).astype(BF16)
    enc_w = jnp.pad(params["enc_w"], ((0, fp - f_in), (0, hp - hidden)))
    enc_b = jnp.pad(params["enc_b"], ((0, 0), (0, hp - hidden)))
    dec_w = jnp.pad(params["dec_w"], ((0, hp - hidden), (0, fp - f_in)))
    dec_b = jnp.pad(params["dec_b"], ((0, 0), (0, fp - f_in)))

    # --- K1: xw_s = inv_r * (X @ W_enc), row-parallel ---
    xw_s = pl.pallas_call(
        _feat_transform_kernel,
        grid=(nt,),
        in_specs=[
            pl.BlockSpec((tm, fp), lambda i: (i, 0)),
            pl.BlockSpec((tm, 1), lambda i: (i, 0)),
            pl.BlockSpec((fp, hp), lambda i: (0, 0)),
        ],
        out_specs=pl.BlockSpec((tm, hp), lambda i: (i, 0)),
        out_shape=jax.ShapeDtypeStruct((np_, hp), BF16),
        compiler_params=pltpu.CompilerParams(
            dimension_semantics=("parallel",), vmem_limit_bytes=_VMEM_LIMIT),
        cost_estimate=pl.CostEstimate(
            flops=2 * np_ * fp * hp, transcendentals=0,
            bytes_accessed=4 * (np_ * fp + np_ + fp * hp) + 2 * np_ * hp),
    )(x_p, inv_r, enc_w)

    # --- K2: aggregate + pool (reduction over row tiles) + coarse decode ---
    x_d = pl.pallas_call(
        _aggregate_pool_decode_kernel,
        grid=(nt,),
        in_specs=[
            pl.BlockSpec((tm, np_), lambda i: (i, 0)),    # adjacency strip (bf16)
            pl.BlockSpec((np_, ncp), lambda i: (0, 0)),   # P, resident (bf16)
            pl.BlockSpec((tm, 1), lambda i: (i, 0)),      # inv_r strip (f32)
            pl.BlockSpec((np_, hp), lambda i: (0, 0)),    # xw_s, resident (bf16)
            pl.BlockSpec((1, hp), lambda i: (0, 0)),      # enc bias
            pl.BlockSpec((hp, fp), lambda i: (0, 0)),     # dec weight
            pl.BlockSpec((1, fp), lambda i: (0, 0)),      # dec bias
        ],
        out_specs=pl.BlockSpec((ncp, fp), lambda i: (0, 0)),
        out_shape=jax.ShapeDtypeStruct((ncp, fp), jnp.float32),
        scratch_shapes=[
            pltpu.VMEM((ncp, hp), jnp.float32),      # x_c accumulator
            pltpu.VMEM((ncp, ncp), jnp.float32),     # a_c accumulator
            pltpu.VMEM((ncp, _CS_W), jnp.float32),   # cluster-size accumulator
        ],
        compiler_params=pltpu.CompilerParams(
            dimension_semantics=("arbitrary",), vmem_limit_bytes=_VMEM_LIMIT),
        cost_estimate=pl.CostEstimate(
            flops=2 * (np_ * np_ * hp + np_ * np_ * ncp + np_ * ncp * hp
                       + np_ * ncp * ncp + np_ * ncp * _CS_W
                       + ncp * hp * fp + ncp * ncp * fp),
            transcendentals=3 * ncp,
            bytes_accessed=(2 * np_ * np_ + 2 * np_ * ncp + 2 * np_ * hp + 4 * np_
                            + 4 * (hp + hp * fp + fp) + 4 * ncp * fp)),
    )(a_bf, p_bf, inv_r, xw_s, enc_b, dec_w, dec_b)

    # --- K3: unpool x_rec = P @ x_d, row-parallel, lane-dense output ---
    out_pad = pl.pallas_call(
        _unpool_kernel,
        grid=(nt,),
        in_specs=[
            pl.BlockSpec((tm, ncp), lambda i: (i, 0)),
            pl.BlockSpec((ncp, fp), lambda i: (0, 0)),
        ],
        out_specs=pl.BlockSpec((tm, fp), lambda i: (i, 0)),
        out_shape=jax.ShapeDtypeStruct((np_, fp), jnp.float32),
        compiler_params=pltpu.CompilerParams(
            dimension_semantics=("parallel",), vmem_limit_bytes=_VMEM_LIMIT),
        cost_estimate=pl.CostEstimate(
            flops=2 * np_ * ncp * fp, transcendentals=0,
            bytes_accessed=2 * np_ * ncp + 4 * ncp * fp + 4 * np_ * fp),
    )(p_bf, x_d)

    return out_pad[:n, :f_in]


# ---------------------------------------------------------------------------
# Driver
# ---------------------------------------------------------------------------
if __name__ == "__main__":
    N = 256          # nodes (exercises 2 row tiles of 128)
    F_IN = 16        # node features (Cora has 1433; small synthetic stand-in)
    HIDDEN = 64      # matches GCNConv(F, 64)
    NC = 32          # number of CMG clusters
    E_RAND = 512     # extra random edges on top of a ring

    key = jax.random.PRNGKey(0)
    k_x, k_e, k_p = jax.random.split(key, 3)

    x = jax.random.normal(k_x, (N, F_IN), jnp.float32)

    ring_src = jnp.arange(N, dtype=jnp.int32)
    ring_dst = (ring_src + 1) % N
    rand = jax.random.randint(k_e, (2, E_RAND), 0, N, jnp.int32)
    edge_index = jnp.concatenate([jnp.stack([ring_src, ring_dst]), rand], axis=1)

    batch = jnp.zeros((N,), jnp.int32)

    # TODO(synk): CMGPooling's combinatorial-multigrid cluster assignment is replaced by a
    # deterministic contiguous block assignment (node i -> i // (N/Nc)).
    cluster_id = jnp.arange(N, dtype=jnp.int32) // (N // NC)
    P = jax.nn.one_hot(cluster_id, NC, dtype=jnp.float32)     # [N, Nc]

    params = init_params(k_p, F_IN, HIDDEN)

    fwd = jax.jit(cmg_autoencoder_forward)
    x_rec = fwd(params, x, edge_index, batch, P)
    jax.block_until_ready(x_rec)

    assert x_rec.shape == (N, F_IN), x_rec.shape
    assert x_rec.dtype == jnp.float32
    assert bool(jnp.all(jnp.isfinite(x_rec)))
    print("KERNEL_OK")
</pallas_src>

<mosaic_0001>
module attributes {stable_mosaic.version = 11 : i64} {
  func.func @_feat_transform_kernel(%arg0: i32, %arg1: memref<128x128xf32, #tpu.memory_space<vmem>>, %arg2: memref<128x1xf32, #tpu.memory_space<vmem>>, %arg3: memref<128x128xf32, #tpu.memory_space<vmem>>, %arg4: memref<128x128xbf16, #tpu.memory_space<vmem>>) attributes {dimension_semantics = [#tpu.dimension_semantics<parallel>], iteration_bounds = array<i64: 2>, scalar_prefetch = 0 : i64, scratch_operands = 0 : i64, tpu.core_type = #tpu.core_type<tc>, window_params = [{transform_indices = @transform_0, window_bounds = array<i64: 128, 128>}, {transform_indices = @transform_1, window_bounds = array<i64: 128, 1>}, {pipeline_mode = #tpu.pipeline_mode<synchronous>, transform_indices = @transform_2, window_bounds = array<i64: 128, 128>}, {transform_indices = @transform_3, window_bounds = array<i64: 128, 128>}]} {
    %c0 = arith.constant 0 : index
    %c0_0 = arith.constant 0 : index
    %0 = vector.load %arg1[%c0, %c0_0] : memref<128x128xf32, #tpu.memory_space<vmem>>, vector<128x128xf32>
    %1 = arith.truncf %0 : vector<128x128xf32> to vector<128x128xbf16>
    %c0_1 = arith.constant 0 : index
    %c0_2 = arith.constant 0 : index
    %2 = vector.load %arg3[%c0_1, %c0_2] : memref<128x128xf32, #tpu.memory_space<vmem>>, vector<128x128xf32>
    %3 = arith.truncf %2 : vector<128x128xf32> to vector<128x128xbf16>
    %cst = arith.constant dense<0.000000e+00> : vector<128x128xf32>
    %4 = tpu.matmul %1, %3, %cst {dimension_numbers = #tpu.dot_dimension_numbers<[1], [0], [0], [1], [0, 0, 1, 1], [], []>} : vector<128x128xbf16>, vector<128x128xbf16>, vector<128x128xf32> -> vector<128x128xf32>
    %c0_3 = arith.constant 0 : index
    %c0_4 = arith.constant 0 : index
    %5 = vector.load %arg2[%c0_3, %c0_4] : memref<128x1xf32, #tpu.memory_space<vmem>>, vector<128x1xf32>
    %6 = vector.broadcast %5 : vector<128x1xf32> to vector<128x128xf32>
    %7 = arith.mulf %6, %4 : vector<128x128xf32>
    %8 = arith.truncf %7 : vector<128x128xf32> to vector<128x128xbf16>
    %c0_5 = arith.constant 0 : index
    %c0_6 = arith.constant 0 : index
    %9 = vector.load %arg4[%c0_5, %c0_6] : memref<128x128xbf16, #tpu.memory_space<vmem>>, vector<128x128xbf16>
    tpu.vector_store %arg4[%c0_5, %c0_6], %8 {strides = array<i32>} : memref<128x128xbf16, #tpu.memory_space<vmem>>, vector<128x128xbf16>,
    return
  }
  func.func @transform_0(%arg0: i32) -> (i32, i32) {
    %c0_i32 = arith.constant 0 : i32
    %c0_i32_0 = arith.constant 0 : i32
    return %arg0, %c0_i32 : i32, i32
  }
  func.func @transform_1(%arg0: i32) -> (i32, i32) {
    %c0_i32 = arith.constant 0 : i32
    %c0_i32_0 = arith.constant 0 : i32
    return %arg0, %c0_i32 : i32, i32
  }
  func.func @transform_2(%arg0: i32) -> (i32, i32) {
    %c0_i32 = arith.constant 0 : i32
    %c0_i32_0 = arith.constant 0 : i32
    %c0_i32_1 = arith.constant 0 : i32
    return %c0_i32, %c0_i32_0 : i32, i32
  }
  func.func @transform_3(%arg0: i32) -> (i32, i32) {
    %c0_i32 = arith.constant 0 : i32
    %c0_i32_0 = arith.constant 0 : i32
    return %arg0, %c0_i32 : i32, i32
  }
}

module attributes {stable_mosaic.version = 11 : i64} {
  func.func @_aggregate_pool_decode_kernel(%arg0: i32, %arg1: memref<128x256xbf16, #tpu.memory_space<vmem>>, %arg2: memref<256x128xbf16, #tpu.memory_space<vmem>>, %arg3: memref<128x1xf32, #tpu.memory_space<vmem>>, %arg4: memref<256x128xbf16, #tpu.memory_space<vmem>>, %arg5: memref<1x128xf32, #tpu.memory_space<vmem>>, %arg6: memref<128x128xf32, #tpu.memory_space<vmem>>, %arg7: memref<1x128xf32, #tpu.memory_space<vmem>>, %arg8: memref<128x128xf32, #tpu.memory_space<vmem>>, %arg9: memref<128x128xf32, #tpu.memory_space<vmem>>, %arg10: memref<128x128xf32, #tpu.memory_space<vmem>>, %arg11: memref<128x128xf32, #tpu.memory_space<vmem>>) attributes {dimension_semantics = [#tpu.dimension_semantics<arbitrary>], iteration_bounds = array<i64: 2>, scalar_prefetch = 0 : i64, scratch_operands = 3 : i64, tpu.core_type = #tpu.core_type<tc>, window_params = [{transform_indices = @transform_0, window_bounds = array<i64: 128, 256>}, {pipeline_mode = #tpu.pipeline_mode<synchronous>, transform_indices = @transform_1, window_bounds = array<i64: 256, 128>}, {transform_indices = @transform_2, window_bounds = array<i64: 128, 1>}, {pipeline_mode = #tpu.pipeline_mode<synchronous>, transform_indices = @transform_3, window_bounds = array<i64: 256, 128>}, {pipeline_mode = #tpu.pipeline_mode<synchronous>, transform_indices = @transform_4, window_bounds = array<i64: 1, 128>}, {pipeline_mode = #tpu.pipeline_mode<synchronous>, transform_indices = @transform_5, window_bounds = array<i64: 128, 128>}, {pipeline_mode = #tpu.pipeline_mode<synchronous>, transform_indices = @transform_6, window_bounds = array<i64: 1, 128>}, {pipeline_mode = #tpu.pipeline_mode<synchronous>, transform_indices = @transform_7, window_bounds = array<i64: 128, 128>}]} {
    %c0_i32 = arith.constant 0 : i32
    %0 = arith.cmpi eq, %arg0, %c0_i32 : i32
    %1 = arith.extui %0 : i1 to i32
    %c0_i32_0 = arith.constant 0 : i32
    %2 = arith.cmpi ne, %1, %c0_i32_0 : i32
    scf.if %2 {
      %cst_30 = arith.constant 0.000000e+00 : f32
      %38 = vector.broadcast %cst_30 : f32 to vector<128x128xf32>
      %c0_31 = arith.constant 0 : index
      %c0_32 = arith.constant 0 : index
      %39 = vector.load %arg9[%c0_31, %c0_32] : memref<128x128xf32, #tpu.memory_space<vmem>>, vector<128x128xf32>
      tpu.vector_store %arg9[%c0_31, %c0_32], %38 {strides = array<i32>} : memref<128x128xf32, #tpu.memory_space<vmem>>, vector<128x128xf32>,
      %cst_33 = arith.constant 0.000000e+00 : f32
      %40 = vector.broadcast %cst_33 : f32 to vector<128x128xf32>
      %c0_34 = arith.constant 0 : index
      %c0_35 = arith.constant 0 : index
      %41 = vector.load %arg10[%c0_34, %c0_35] : memref<128x128xf32, #tpu.memory_space<vmem>>, vector<128x128xf32>
      tpu.vector_store %arg10[%c0_34, %c0_35], %40 {strides = array<i32>} : memref<128x128xf32, #tpu.memory_space<vmem>>, vector<128x128xf32>,
      %cst_36 = arith.constant 0.000000e+00 : f32
      %42 = vector.broadcast %cst_36 : f32 to vector<128x128xf32>
      %c0_37 = arith.constant 0 : index
      %c0_38 = arith.constant 0 : index
      %43 = vector.load %arg11[%c0_37, %c0_38] : memref<128x128xf32, #tpu.memory_space<vmem>>, vector<128x128xf32>
      tpu.vector_store %arg11[%c0_37, %c0_38], %42 {strides = array<i32>} : memref<128x128xf32, #tpu.memory_space<vmem>>, vector<128x128xf32>,
    } else {
    }
    %c0 = arith.constant 0 : index
    %c0_1 = arith.constant 0 : index
    %3 = vector.load %arg1[%c0, %c0_1] : memref<128x256xbf16, #tpu.memory_space<vmem>>, vector<128x256xbf16>
    %c0_2 = arith.constant 0 : index
    %c0_3 = arith.constant 0 : index
    %4 = vector.load %arg4[%c0_2, %c0_3] : memref<256x128xbf16, #tpu.memory_space<vmem>>, vector<256x128xbf16>
    %cst = arith.constant dense<0.000000e+00> : vector<128x128xf32>
    %5 = tpu.matmul %3, %4, %cst {dimension_numbers = #tpu.dot_dimension_numbers<[1], [0], [0], [1], [0, 0, 1, 1], [], []>} : vector<128x256xbf16>, vector<256x128xbf16>, vector<128x128xf32> -> vector<128x128xf32>
    %c0_4 = arith.constant 0 : index
    %c0_5 = arith.constant 0 : index
    %6 = vector.load %arg3[%c0_4, %c0_5] : memref<128x1xf32, #tpu.memory_space<vmem>>, vector<128x1xf32>
    %7 = vector.broadcast %6 : vector<128x1xf32> to vector<128x128xf32>
    %8 = arith.mulf %7, %5 : vector<128x128xf32>
    %c0_6 = arith.constant 0 : index
    %c0_7 = arith.constant 0 : index
    %9 = vector.load %arg5[%c0_6, %c0_7] : memref<1x128xf32, #tpu.memory_space<vmem>>, vector<1x128xf32>
    %10 = vector.broadcast %9 : vector<1x128xf32> to vector<128x128xf32>
    %11 = arith.addf %8, %10 : vector<128x128xf32>
    %cst_8 = arith.constant 0.000000e+00 : f32
    %12 = vector.broadcast %cst_8 : f32 to vector<128x128xf32>
    %13 = arith.maximumf %11, %12 : vector<128x128xf32>
    %c128_i32 = arith.constant 128 : i32
    %14 = arith.muli %arg0, %c128_i32 : i32
    %15 = tpu.assume_multiple %14, 128 : i32
    %16 = arith.index_cast %15 : i32 to index
    %c0_9 = arith.constant 0 : index
    %17 = vector.load %arg2[%16, %c0_9] : memref<256x128xbf16, #tpu.memory_space<vmem>>, vector<128x128xbf16>
    %c0_10 = arith.constant 0 : index
    %c0_11 = arith.constant 0 : index
    %18 = vector.load %arg9[%c0_10, %c0_11] : memref<128x128xf32, #tpu.memory_space<vmem>>, vector<128x128xf32>
    %19 = arith.truncf %13 : vector<128x128xf32> to vector<128x128xbf16>
    %cst_12 = arith.constant dense<0.000000e+00> : vector<128x128xf32>
    %20 = tpu.matmul %17, %19, %cst_12 {dimension_numbers = #tpu.dot_dimension_numbers<[0], [0], [1], [1], [0, 1, 1, 1], [], []>} : vector<128x128xbf16>, vector<128x128xbf16>, vector<128x128xf32> -> vector<128x128xf32>
    %21 = arith.addf %18, %20 : vector<128x128xf32>
    %c0_13 = arith.constant 0 : index
    %c0_14 = arith.constant 0 : index
    %22 = vector.load %arg9[%c0_13, %c0_14] : memref<128x128xf32, #tpu.memory_space<vmem>>, vector<128x128xf32>
    tpu.vector_store %arg9[%c0_13, %c0_14], %21 {strides = array<i32>} : memref<128x128xf32, #tpu.memory_space<vmem>>, vector<128x128xf32>,
    %c0_15 = arith.constant 0 : index
    %c0_16 = arith.constant 0 : index
    %23 = vector.load %arg2[%c0_15, %c0_16] : memref<256x128xbf16, #tpu.memory_space<vmem>>, vector<256x128xbf16>
    %cst_17 = arith.constant dense<0.000000e+00> : vector<128x128xf32>
    %24 = tpu.matmul %3, %23, %cst_17 {dimension_numbers = #tpu.dot_dimension_numbers<[1], [0], [0], [1], [0, 0, 1, 1], [], []>} : vector<128x256xbf16>, vector<256x128xbf16>, vector<128x128xf32> -> vector<128x128xf32>
    %c0_18 = arith.constant 0 : index
    %c0_19 = arith.constant 0 : index
    %25 = vector.load %arg10[%c0_18, %c0_19] : memref<128x128xf32, #tpu.memory_space<vmem>>, vector<128x128xf32>
    %26 = arith.truncf %24 : vector<128x128xf32> to vector<128x128xbf16>
    %cst_20 = arith.constant dense<0.000000e+00> : vector<128x128xf32>
    %27 = tpu.matmul %17, %26, %cst_20 {dimension_numbers = #tpu.dot_dimension_numbers<[0], [0], [1], [1], [0, 1, 1, 1], [], []>} : vector<128x128xbf16>, vector<128x128xbf16>, vector<128x128xf32> -> vector<128x128xf32>
    %28 = arith.addf %25, %27 : vector<128x128xf32>
    %c0_21 = arith.constant 0 : index
    %c0_22 = arith.constant 0 : index
    %29 = vector.load %arg10[%c0_21, %c0_22] : memref<128x128xf32, #tpu.memory_space<vmem>>, vector<128x128xf32>
    tpu.vector_store %arg10[%c0_21, %c0_22], %28 {strides = array<i32>} : memref<128x128xf32, #tpu.memory_space<vmem>>, vector<128x128xf32>,
    %c0_23 = arith.constant 0 : index
    %c0_24 = arith.constant 0 : index
    %30 = vector.load %arg11[%c0_23, %c0_24] : memref<128x128xf32, #tpu.memory_space<vmem>>, vector<128x128xf32>
    %cst_25 = arith.constant 1.000000e+00 : bf16
    %31 = vector.broadcast %cst_25 : bf16 to vector<128x128xbf16>
    %cst_26 = arith.constant dense<0.000000e+00> : vector<128x128xf32>
    %32 = tpu.matmul %17, %31, %cst_26 {dimension_numbers = #tpu.dot_dimension_numbers<[0], [0], [1], [1], [0, 1, 1, 1], [], []>} : vector<128x128xbf16>, vector<128x128xbf16>, vector<128x128xf32> -> vector<128x128xf32>
    %33 = arith.addf %30, %32 : vector<128x128xf32>
    %c0_27 = arith.constant 0 : index
    %c0_28 = arith.constant 0 : index
    %34 = vector.load %arg11[%c0_27, %c0_28] : memref<128x128xf32, #tpu.memory_space<vmem>>, vector<128x128xf32>
    tpu.vector_store %arg11[%c0_27, %c0_28], %33 {strides = array<i32>} : memref<128x128xf32, #tpu.memory_space<vmem>>, vector<128x128xf32>,
    %c1_i32 = arith.constant 1 : i32
    %35 = arith.cmpi eq, %arg0, %c1_i32 : i32
    %36 = arith.extui %35 : i1 to i32
    %c0_i32_29 = arith.constant 0 : i32
    %37 = arith.cmpi ne, %36, %c0_i32_29 : i32
    scf.if %37 {
      %c0_30 = arith.constant 0 : index
      %c0_31 = arith.constant 0 : index
      %38 = vector.load %arg11[%c0_30, %c0_31] : memref<128x128xf32, #tpu.memory_space<vmem>>, vector<128x1xf32>
      %cst_32 = arith.constant 1.000000e+00 : f32
      %39 = vector.broadcast %cst_32 : f32 to vector<128x1xf32>
      %40 = arith.maximumf %38, %39 : vector<128x1xf32>
      %c0_33 = arith.constant 0 : index
      %c0_34 = arith.constant 0 : index
      %41 = vector.load %arg9[%c0_33, %c0_34] : memref<128x128xf32, #tpu.memory_space<vmem>>, vector<128x128xf32>
      %42 = tpu.reciprocal %40 {approx = true} : vector<128x1xf32> -> vector<128x1xf32>
      %43 = vector.broadcast %42 : vector<128x1xf32> to vector<128x128xf32>
      %44 = arith.mulf %41, %43 : vector<128x128xf32>
      %c0_35 = arith.constant 0 : index
      %c0_36 = arith.constant 0 : index
      %45 = vector.load %arg10[%c0_35, %c0_36] : memref<128x128xf32, #tpu.memory_space<vmem>>, vector<128x128xf32>
      %46 = tpu.iota {dimensions = array<i32: 0>} : vector<128x128xi32>
      %47 = tpu.iota {dimensions = array<i32: 1>} : vector<128x128xi32>
      %48 = arith.cmpi eq, %46, %47 : vector<128x128xi32>
      %49 = arith.extui %48 : vector<128x128xi1> to vector<128x128xi32>
      %50 = arith.sitofp %49 : vector<128x128xi32> to vector<128x128xf32>
      %cst_37 = arith.constant 0.000000e+00 : f32
      %51 = vector.broadcast %cst_37 : f32 to vector<128x128xf32>
      %52 = arith.cmpf ogt, %45, %51 : vector<128x128xf32>
      %cst_38 = arith.constant 1.000000e+00 : f32
      %cst_39 = arith.constant 0.000000e+00 : f32
      %53 = vector.broadcast %cst_38 : f32 to vector<128x128xf32>
      %54 = vector.broadcast %cst_39 : f32 to vector<128x128xf32>
      %55 = arith.select %52, %53, %54 : vector<128x128xi1>, vector<128x128xf32>
      %cst_40 = arith.constant 1.000000e+00 : f32
      %56 = vector.broadcast %cst_40 : f32 to vector<128x128xf32>
      %57 = arith.subf %56, %50 : vector<128x128xf32>
      %58 = arith.mulf %55, %57 : vector<128x128xf32>
      %59 = arith.addf %58, %50 : vector<128x128xf32>
      %cst_41 = arith.constant dense<0.000000e+00> : vector<128xf32>
      %60 = vector.multi_reduction <add>, %59, %cst_41 [1] : vector<128x128xf32> to vector<128xf32>
      %61 = vector.shape_cast %60 : vector<128xf32> to vector<128x1xf32>
      %62 = math.rsqrt %61 : vector<128x1xf32>
      %63 = arith.truncf %44 : vector<128x128xf32> to vector<128x128xbf16>
      %c0_42 = arith.constant 0 : index
      %c0_43 = arith.constant 0 : index
      %64 = vector.load %arg6[%c0_42, %c0_43] : memref<128x128xf32, #tpu.memory_space<vmem>>, vector<128x128xf32>
      %65 = arith.truncf %64 : vector<128x128xf32> to vector<128x128xbf16>
      %cst_44 = arith.constant dense<0.000000e+00> : vector<128x128xf32>
      %66 = tpu.matmul %63, %65, %cst_44 {dimension_numbers = #tpu.dot_dimension_numbers<[1], [0], [0], [1], [0, 0, 1, 1], [], []>} : vector<128x128xbf16>, vector<128x128xbf16>, vector<128x128xf32> -> vector<128x128xf32>
      %67 = arith.truncf %59 : vector<128x128xf32> to vector<128x128xbf16>
      %68 = vector.broadcast %62 : vector<128x1xf32> to vector<128x128xf32>
      %69 = arith.mulf %68, %66 : vector<128x128xf32>
      %70 = arith.truncf %69 : vector<128x128xf32> to vector<128x128xbf16>
      %cst_45 = arith.constant dense<0.000000e+00> : vector<128x128xf32>
      %71 = tpu.matmul %67, %70, %cst_45 {dimension_numbers = #tpu.dot_dimension_numbers<[1], [0], [0], [1], [0, 0, 1, 1], [], []>} : vector<128x128xbf16>, vector<128x128xbf16>, vector<128x128xf32> -> vector<128x128xf32>
      %72 = vector.broadcast %62 : vector<128x1xf32> to vector<128x128xf32>
      %73 = arith.mulf %72, %71 : vector<128x128xf32>
      %c0_46 = arith.constant 0 : index
      %c0_47 = arith.constant 0 : index
      %74 = vector.load %arg7[%c0_46, %c0_47] : memref<1x128xf32, #tpu.memory_space<vmem>>, vector<1x128xf32>
      %75 = vector.broadcast %74 : vector<1x128xf32> to vector<128x128xf32>
      %76 = arith.addf %73, %75 : vector<128x128xf32>
      %c0_48 = arith.constant 0 : index
      %c0_49 = arith.constant 0 : index
      %77 = vector.load %arg8[%c0_48, %c0_49] : memref<128x128xf32, #tpu.memory_space<vmem>>, vector<128x128xf32>
      tpu.vector_store %arg8[%c0_48, %c0_49], %76 {strides = array<i32>} : memref<128x128xf32, #tpu.memory_space<vmem>>, vector<128x128xf32>,
    } else {
    }
    return
  }
  func.func @transform_0(%arg0: i32) -> (i32, i32) {
    %c0_i32 = arith.constant 0 : i32
    %c0_i32_0 = arith.constant 0 : i32
    return %arg0, %c0_i32 : i32, i32
  }
  func.func @transform_1(%arg0: i32) -> (i32, i32) {
    %c0_i32 = arith.constant 0 : i32
    %c0_i32_0 = arith.constant 0 : i32
    %c0_i32_1 = arith.constant 0 : i32
    return %c0_i32, %c0_i32_0 : i32, i32
  }
  func.func @transform_2(%arg0: i32) -> (i32, i32) {
    %c0_i32 = arith.constant 0 : i32
    %c0_i32_0 = arith.constant 0 : i32
    return %arg0, %c0_i32 : i32, i32
  }
  func.func @transform_3(%arg0: i32) -> (i32, i32) {
    %c0_i32 = arith.constant 0 : i32
    %c0_i32_0 = arith.constant 0 : i32
    %c0_i32_1 = arith.constant 0 : i32
    return %c0_i32, %c0_i32_0 : i32, i32
  }
  func.func @transform_4(%arg0: i32) -> (i32, i32) {
    %c0_i32 = arith.constant 0 : i32
    %c0_i32_0 = arith.constant 0 : i32
    %c0_i32_1 = arith.constant 0 : i32
    return %c0_i32, %c0_i32_0 : i32, i32
  }
  func.func @transform_5(%arg0: i32) -> (i32, i32) {
    %c0_i32 = arith.constant 0 : i32
    %c0_i32_0 = arith.constant 0 : i32
    %c0_i32_1 = arith.constant 0 : i32
    return %c0_i32, %c0_i32_0 : i32, i32
  }
  func.func @transform_6(%arg0: i32) -> (i32, i32) {
    %c0_i32 = arith.constant 0 : i32
    %c0_i32_0 = arith.constant 0 : i32
    %c0_i32_1 = arith.constant 0 : i32
    return %c0_i32, %c0_i32_0 : i32, i32
  }
  func.func @transform_7(%arg0: i32) -> (i32, i32) {
    %c0_i32 = arith.constant 0 : i32
    %c0_i32_0 = arith.constant 0 : i32
    %c0_i32_1 = arith.constant 0 : i32
    return %c0_i32, %c0_i32_0 : i32, i32
  }
}

module attributes {stable_mosaic.version = 11 : i64} {
  func.func @_unpool_kernel(%arg0: i32, %arg1: memref<128x128xbf16, #tpu.memory_space<vmem>>, %arg2: memref<128x128xf32, #tpu.memory_space<vmem>>, %arg3: memref<128x128xf32, #tpu.memory_space<vmem>>) attributes {dimension_semantics = [#tpu.dimension_semantics<parallel>], iteration_bounds = array<i64: 2>, scalar_prefetch = 0 : i64, scratch_operands = 0 : i64, tpu.core_type = #tpu.core_type<tc>, window_params = [{transform_indices = @transform_0, window_bounds = array<i64: 128, 128>}, {pipeline_mode = #tpu.pipeline_mode<synchronous>, transform_indices = @transform_1, window_bounds = array<i64: 128, 128>}, {transform_indices = @transform_2, window_bounds = array<i64: 128, 128>}]} {
    %c0 = arith.constant 0 : index
    %c0_0 = arith.constant 0 : index
    %0 = vector.load %arg1[%c0, %c0_0] : memref<128x128xbf16, #tpu.memory_space<vmem>>, vector<128x128xbf16>
    %c0_1 = arith.constant 0 : index
    %c0_2 = arith.constant 0 : index
    %1 = vector.load %arg2[%c0_1, %c0_2] : memref<128x128xf32, #tpu.memory_space<vmem>>, vector<128x128xf32>
    %2 = arith.truncf %1 : vector<128x128xf32> to vector<128x128xbf16>
    %cst = arith.constant dense<0.000000e+00> : vector<128x128xf32>
    %3 = tpu.matmul %0, %2, %cst {dimension_numbers = #tpu.dot_dimension_numbers<[1], [0], [0], [1], [0, 0, 1, 1], [], []>} : vector<128x128xbf16>, vector<128x128xbf16>, vector<128x128xf32> -> vector<128x128xf32>
    %c0_3 = arith.constant 0 : index
    %c0_4 = arith.constant 0 : index
    %4 = vector.load %arg3[%c0_3, %c0_4] : memref<128x128xf32, #tpu.memory_space<vmem>>, vector<128x128xf32>
    tpu.vector_store %arg3[%c0_3, %c0_4], %3 {strides = array<i32>} : memref<128x128xf32, #tpu.memory_space<vmem>>, vector<128x128xf32>,
    return
  }
  func.func @transform_0(%arg0: i32) -> (i32, i32) {
    %c0_i32 = arith.constant 0 : i32
    %c0_i32_0 = arith.constant 0 : i32
    return %arg0, %c0_i32 : i32, i32
  }
  func.func @transform_1(%arg0: i32) -> (i32, i32) {
    %c0_i32 = arith.constant 0 : i32
    %c0_i32_0 = arith.constant 0 : i32
    %c0_i32_1 = arith.constant 0 : i32
    return %c0_i32, %c0_i32_0 : i32, i32
  }
  func.func @transform_2(%arg0: i32) -> (i32, i32) {
    %c0_i32 = arith.constant 0 : i32
    %c0_i32_0 = arith.constant 0 : i32
    return %arg0, %c0_i32 : i32, i32
  }
}

</mosaic_0001>

<bundles_post_ra>
// kernel: cmg_autoencoder_forward.3
= control target key start
LH: loop header
LB: loop body
LE: loop exit
PB: predicated region body
PF: predicated region fallthrough
CT: control target
= control target key end

     0   :  { %s798_s12 = smov 0   ;;  %s916_s0 = inlined_call_operand.vmem [shape: f32[256,128], index: 0, kind: input, shape index: {}]   ;;  %s917_s1 = inlined_call_operand.vmem [shape: f32[256,1], index: 1, kind: input, shape index: {}]   ;;  %s918_s2 = inlined_call_operand.vmem [shape: f32[128,128], index: 2, kind: input, shape index: {}]   ;;  %s919_s3 = inlined_call_operand.vmem [shape: bf16[256,128], index: 3, kind: output, shape index: {}]  }
   0x1 LB: > { %s602_s13 = sadd.s32 4294967295, %s775_s12   ;;  %p606_p0 = scmp.ge.s32.totalorder %s775_s12, 1  ;;  %s775_s12 = sphi %s798_s12, %s13_s12  }
   0x2   : > { %p149_p1 = scmp.lt.s32.totalorder %s775_s12, 3 }
   0x4   : > { %p150_p2 = pnand %p606_p0, %p149_p1 }
   0x5   : > { %s607_s20 = sshll.u32 (!%p150_p2), %s602_s13, 4 }
   0x6   : > { %153 = sbr.rel (%p150_p2) target bundleno = 258 (0x102), region = 32  ;;  %p179_p3 = scmp.lt.s32.totalorder (!%p150_p2), %s607_s20, 31 }
   0xb   : > { %v235_v0 = vld [vmem:[%s918_s2 + $0x70] sm:$0xff]  ;;  %v236_v1 = vld [vmem:[%s918_s2 + $0x78] sm:$0xff]  ;;  %v233_v2 = vld [vmem:[%s918_s2 + $0x60] sm:$0xff]  ;;  %v777_v5 = vmov 0   ;;  %s921_s20 = smov (!%p179_p3, %s607_s20), 31 }
   0xc   : > { %v244_v3 = vpack.c.bf16 %v236_v1, %v235_v0  ;;  %v234_v4 = vld [vmem:[%s918_s2 + $0x68] sm:$0xff]  ;;  %768 = vset.pattern.permute.xlu1 %v777_v5  ;;  %767 = vset.pattern.permute.xlu0 %v777_v5  ;;  %v231_v7 = vld [vmem:[%s918_s2 + $0x50] sm:$0xff]  ;;  %v232_v8 = vld [vmem:[%s918_s2 + $0x58] sm:$0xff]  ;;  %s608_s27 = sshll.u32 %s921_s20, 3  ;;  %s612_s29 = sshll.u32 %s921_s20, 2 }
   0xd   : > { %v243_v6 = vpack.c.bf16 %v234_v4, %v233_v2  ;;  %v242_v9 = vpack.c.bf16 %v232_v8, %v231_v7  ;;  %v229_v10 = vld [vmem:[%s918_s2 + $0x40] sm:$0xff]  ;;  %v230_v11 = vld [vmem:[%s918_s2 + $0x48] sm:$0xff]  ;;  %s836_s7 = scalar_lea.vmem %s916_s0, %s608_s27  ;;  %s845_s10 = scalar_lea.vmem %s917_s1, %s608_s27  ;;  %v227_v19 = vld [vmem:[%s918_s2 + $0x30] sm:$0xff] }
   0xe   : > { %710 = vmatprep.subr.bf16.mxu0 %v244_v3  ;;  %742 = vmatprep.subr.bf16.mxu1 %v244_v3  ;;  %v197_v12 = vld [vmem:[%s836_s7] sm:$0xff]  ;;  %v198_v13 = vld [vmem:[%s836_s7 + $0x8] sm:$0xff]  ;;  %v241_v17 = vpack.c.bf16 %v230_v11, %v229_v10  ;;  %v228_v20 = vld [vmem:[%s918_s2 + $0x38] sm:$0xff]  ;;  %s903_s5 = scalar_lea.vmem %s919_s3, %s612_s29 }
   0xf   : > { %711 = vmatpush3.bf16.msra.mxu0 %v244_v3  ;;  %750 = vmatpush3.bf16.msra.mxu1 %v244_v3  ;;  %v205_v14 = vld [vmem:[%s836_s7 + $0x40] sm:$0xff]  ;;  %v213_v15 = vpack.c.bf16 %v198_v13, %v197_v12  ;;  %v206_v16 = vld [vmem:[%s836_s7 + $0x48] sm:$0xff]  ;;  %v344_v21 = vld [vmem:[%s845_s10 + $0x10] sm:$0xff]  ;;  %v240_v23 = vpack.c.bf16 %v228_v20, %v227_v19 }
  0x10   : > { %712 = vmatprep.subr.bf16.mxu0 %v243_v6  ;;  %743 = vmatprep.subr.bf16.mxu1 %v243_v6  ;;  %v217_v18 = vpack.c.bf16 %v206_v16, %v205_v14  ;;  %v342_v22 = vld [vmem:[%s845_s10] sm:$0xff]  ;;  %v226_v25 = vld [vmem:[%s918_s2 + $0x28] sm:$0xff]  ;;  %v345_v26 = vld [vmem:[%s845_s10 + $0x18] sm:$0xff] }
  0x11   : > { %726 = vmatprep.mubr.bf16.mxu0 %v213_v15  ;;  %v225_v24 = vld [vmem:[%s918_s2 + $0x20] sm:$0xff]  ;;  %370 = vperm.xlu1 %768, %v344_v21   ;;  %v343_v27 = vld [vmem:[%s845_s10 + $0x8] sm:$0xff]  ;;  %v223_v29 = vld [vmem:[%s918_s2 + $0x10] sm:$0xff] }
  0x12   : > { %734 = vmatprep.mubr.bf16.mxu1 %v217_v18  ;;  %360 = vperm.xlu0 %767, %v342_v22   ;;  %v239_v28 = vpack.c.bf16 %v226_v25, %v225_v24  ;;  %v224_v30 = vld [vmem:[%s918_s2 + $0x18] sm:$0xff]  ;;  %v347_v31 = vld [vmem:[%s845_s10 + $0x28] sm:$0xff]  ;;  %v346_v32 = vld [vmem:[%s845_s10 + $0x20] sm:$0xff] }
  0x13   : > { %713 = vmatpush3.bf16.msra.mxu0 %v243_v6  ;;  %751 = vmatpush3.bf16.msra.mxu1 %v243_v6  ;;  %v238_v33 = vpack.c.bf16 %v224_v30, %v223_v29  ;;  %v221_v34 = vld [vmem:[%s918_s2] sm:$0xff]  ;;  %v222_v35 = vld [vmem:[%s918_s2 + $0x8] sm:$0xff]  ;;  %v349_v36 = vld [vmem:[%s845_s10 + $0x38] sm:$0xff] }
  0x14   : > { %714 = vmatprep.subr.bf16.mxu0 %v242_v9  ;;  %744 = vmatprep.subr.bf16.mxu1 %v242_v9  ;;  %v348_v37 = vld [vmem:[%s845_s10 + $0x30] sm:$0xff]  ;;  %v237_v38 = vpack.c.bf16 %v222_v35, %v221_v34  ;;  %v200_v40 = vld [vmem:[%s836_s7 + $0x18] sm:$0xff]  ;;  %v351_v41 = vld [vmem:[%s845_s10 + $0x48] sm:$0xff] }
  0x15   : > { %375 = vperm.xlu1 %768, %v345_v26   ;;  %v199_v39 = vld [vmem:[%s836_s7 + $0x10] sm:$0xff]  ;;  %v350_v42 = vld [vmem:[%s845_s10 + $0x40] sm:$0xff]  ;;  %v208_v44 = vld [vmem:[%s836_s7 + $0x58] sm:$0xff] }
  0x16   : > { %365 = vperm.xlu0 %767, %v343_v27   ;;  %v207_v43 = vld [vmem:[%s836_s7 + $0x50] sm:$0xff]  ;;  %v201_v45 = vld [vmem:[%s836_s7 + $0x20] sm:$0xff]  ;;  %v202_v46 = vld [vmem:[%s836_s7 + $0x28] sm:$0xff]  ;;  %v214_v49 = vpack.c.bf16 %v200_v40, %v199_v39 }
  0x17   : > { %715 = vmatpush3.bf16.msra.mxu0 %v242_v9  ;;  %752 = vmatpush3.bf16.msra.mxu1 %v242_v9  ;;  %v209_v47 = vld [vmem:[%s836_s7 + $0x60] sm:$0xff]  ;;  %v210_v48 = vld [vmem:[%s836_s7 + $0x68] sm:$0xff]  ;;  %v218_v50 = vpack.c.bf16 %v208_v44, %v207_v43  ;;  %v353_v51 = vld [vmem:[%s845_s10 + $0x58] sm:$0xff]  ;;  %v215_v53 = vpack.c.bf16 %v202_v46, %v201_v45 }
  0x18   : > { %716 = vmatprep.subr.bf16.mxu0 %v241_v17  ;;  %745 = vmatprep.subr.bf16.mxu1 %v241_v17  ;;  %v352_v52 = vld [vmem:[%s845_s10 + $0x50] sm:$0xff]  ;;  %v219_v54 = vpack.c.bf16 %v210_v48, %v209_v47  ;;  %v355_v56 = vld [vmem:[%s845_s10 + $0x68] sm:$0xff]  ;;  %v354_v57 = vld [vmem:[%s845_s10 + $0x60] sm:$0xff] }
  0x19   : > { %385 = vperm.xlu1 %768, %v347_v31   ;;  %v203_v55 = vld [vmem:[%s836_s7 + $0x30] sm:$0xff]  ;;  %v204_v58 = vld [vmem:[%s836_s7 + $0x38] sm:$0xff] }
  0x1a   : > { %380 = vperm.xlu0 %767, %v346_v32   ;;  %v211_v59 = vld [vmem:[%s836_s7 + $0x70] sm:$0xff]  ;;  %v212_v60 = vld [vmem:[%s836_s7 + $0x78] sm:$0xff]  ;;  %v216_v61 = vpack.c.bf16 %v204_v58, %v203_v55 }
  0x1b   : > { %717 = vmatpush3.bf16.msra.mxu0 %v241_v17  ;;  %753 = vmatpush3.bf16.msra.mxu1 %v241_v17  ;;  %v220_v62 = vpack.c.bf16 %v212_v60, %v211_v59  ;;  %v357_v63 = vld [vmem:[%s845_s10 + $0x78] sm:$0xff]  ;;  %v356_v0 = vld [vmem:[%s845_s10 + $0x70] sm:$0xff] }
  0x1c   : > { %718 = vmatprep.subr.bf16.mxu0 %v240_v23  ;;  %746 = vmatprep.subr.bf16.mxu1 %v240_v23 }
  0x1d   : > { %395 = vperm.xlu1 %768, %v349_v36  }
  0x1e   : > { %390 = vperm.xlu0 %767, %v348_v37  }
  0x1f   : > { %719 = vmatpush3.bf16.msra.mxu0 %v240_v23  ;;  %754 = vmatpush3.bf16.msra.mxu1 %v240_v23 }
  0x20   : > { %720 = vmatprep.subr.bf16.mxu0 %v239_v28  ;;  %747 = vmatprep.subr.bf16.mxu1 %v239_v28 }
  0x21   : > { %405 = vperm.xlu1 %768, %v351_v41  }
  0x22   : > { %400 = vperm.xlu0 %767, %v350_v42  }
  0x23   : > { %721 = vmatpush3.bf16.msra.mxu0 %v239_v28  ;;  %755 = vmatpush3.bf16.msra.mxu1 %v239_v28 }
  0x24   : > { %722 = vmatprep.subr.bf16.mxu0 %v238_v33  ;;  %748 = vmatprep.subr.bf16.mxu1 %v238_v33 }
  0x25   : > { %415 = vperm.xlu1 %768, %v353_v51  }
  0x26   : > { %410 = vperm.xlu0 %767, %v352_v52  }
  0x27   : > { %723 = vmatpush3.bf16.msra.mxu0 %v238_v33  ;;  %756 = vmatpush3.bf16.msra.mxu1 %v238_v33 }
  0x28   : > { %724 = vmatprep.subr.bf16.mxu0 %v237_v38  ;;  %749 = vmatprep.subr.bf16.mxu1 %v237_v38 }
  0x29   : > { %425 = vperm.xlu1 %768, %v355_v56  }
  0x2a   : > { %420 = vperm.xlu0 %767, %v354_v57  }
  0x2b   : > { %725 = vmatpush3.bf16.msra.mxu0 %v237_v38  ;;  %757 = vmatpush3.bf16.msra.mxu1 %v237_v38 }
  0x2d   : > { %435 = vperm.xlu1 %768, %v357_v63  }
  0x2e   : > { %727 = vmatmul.mubr.bf16.vlgmr.msra.gmra.mxu0 %v214_v49  ;;  %735 = vmatmul.mubr.bf16.vlgmr.msra.gmra.mxu1 %v218_v50 }
  0x2f   : > { %730 = vmatprep.mubr.bf16.mxu0 %v215_v53  ;;  %738 = vmatprep.mubr.bf16.mxu1 %v219_v54 }
  0x30   : > { %430 = vperm.xlu0 %767, %v356_v0  }
  0x36   : > { %731 = vmatmul.mubr.bf16.gmra.mxu0 %v216_v61  ;;  %739 = vmatmul.mubr.bf16.gmra.mxu1 %v220_v62 }
  0x8c   : > { %v371_v1 = vpop.permute.xlu1 %370 }
  0x8d   : > { %v361_v2 = vpop.permute.xlu0 %360 }
  0x90   : > { %v376_v3 = vpop.permute.xlu1 %375 }
  0x91   : > { %v366_v4 = vpop.permute.xlu0 %365 }
  0x94   : > { %v386_v5 = vpop.permute.xlu1 %385 }
  0x95   : > { %v381_v6 = vpop.permute.xlu0 %380 }
  0x98   : > { %v396_v7 = vpop.permute.xlu1 %395 }
  0x99   : > { %v391_v8 = vpop.permute.xlu0 %390 }
  0x9c   : > { %v406_v9 = vpop.permute.xlu1 %405 }
  0x9d   : > { %v401_v10 = vpop.permute.xlu0 %400 }
  0xa0   : > { %v416_v11 = vpop.permute.xlu1 %415 }
  0xa1   : > { %v411_v12 = vpop.permute.xlu0 %410 }
  0xa4   : > { %v426_v19 = vpop.permute.xlu1 %425 }
  0xa5   : > { %v421_v20 = vpop.permute.xlu0 %420 }
  0xa8   : > { %v436_v39 = vpop.permute.xlu1 %435 }
  0xab   : > { %v431_v40 = vpop.permute.xlu0 %430 }
  0xee   : > { %v728_v13 = vpop.f32.mrf.mxu0  ;;  %v736_v14 = vpop.f32.mrf.mxu1 }
  0xef   : > { %v440_v21 = vmul.f32 %v728_v13, %v371_v1  ;;  %v448_v22 = vmul.f32 %v736_v14, %v411_v12 }
  0xf0   : > { %v279_v15 = vpop.f32.mrf.mxu0  ;;  %v311_v16 = vpop.f32.mrf.mxu1 }
  0xf1   : > { %v438_v25 = vmul.f32 %v361_v2, %v279_v15  ;;  %v446_v26 = vmul.f32 %v401_v10, %v311_v16 }
  0xf2   : > { %v729_v17 = vpop.f32.mrf.mxu0  ;;  %v737_v18 = vpop.f32.mrf.mxu1 }
  0xf3   : > { %v441_v23 = vmul.f32 %v729_v17, %v376_v3  ;;  %v449_v24 = vmul.f32 %v737_v18, %v416_v11 }
  0xf4   : > { %v282_v27 = vpop.f32.mrf.mxu0  ;;  %v314_v28 = vpop.f32.mrf.mxu1 }
  0xf5   : > { %v655_v29 = vpack.c.bf16 %v441_v23, %v440_v21  ;;  %v675_v30 = vpack.c.bf16 %v449_v24, %v448_v22  ;;  %v439_v31 = vmul.f32 %v366_v4, %v282_v27  ;;  %v447_v32 = vmul.f32 %v406_v9, %v314_v28 }
  0xf6   : > { %v732_v33 = vpop.f32.mrf.mxu0  ;;  %v740_v34 = vpop.f32.mrf.mxu1 }
  0xf7   : > { %687 = vst [vmem:[%s903_s5 + $0x8] sm:$0xff] %v655_v29   ;;  %691 = vst [vmem:[%s903_s5 + $0x28] sm:$0xff] %v675_v30   ;;  %v650_v35 = vpack.c.bf16 %v439_v31, %v438_v25  ;;  %v670_v36 = vpack.c.bf16 %v447_v32, %v446_v26  ;;  %v444_v43 = vmul.f32 %v732_v33, %v391_v8 }
  0xf8   : > { %v295_v37 = vpop.f32.mrf.mxu0  ;;  %v327_v38 = vpop.f32.mrf.mxu1  ;;  %v452_v44 = vmul.f32 %v740_v34, %v431_v40 }
  0xf9   : > { %651 = vst [vmem:[%s903_s5] sm:$0xff] %v650_v35   ;;  %690 = vst [vmem:[%s903_s5 + $0x20] sm:$0xff] %v670_v36   ;;  %v442_v47 = vmul.f32 %v381_v6, %v295_v37  ;;  %v450_v48 = vmul.f32 %v421_v20, %v327_v38 }
  0xfa   : > { %v733_v41 = vpop.f32.mrf.mxu0  ;;  %v741_v42 = vpop.f32.mrf.mxu1 }
  0xfb   : > { %v445_v45 = vmul.f32 %v733_v41, %v396_v7  ;;  %v453_v46 = vmul.f32 %v741_v42, %v436_v39 }
  0xfc   : > { %v298_v49 = vpop.f32.mrf.mxu0  ;;  %v330_v50 = vpop.f32.mrf.mxu1 }
  0xfd   : > { %v665_v51 = vpack.c.bf16 %v445_v45, %v444_v43  ;;  %v685_v52 = vpack.c.bf16 %v453_v46, %v452_v44  ;;  %v443_v53 = vmul.f32 %v386_v5, %v298_v49  ;;  %v451_v54 = vmul.f32 %v426_v19, %v330_v50 }
  0xff   : > { %689 = vst [vmem:[%s903_s5 + $0x18] sm:$0xff] %v665_v51   ;;  %693 = vst [vmem:[%s903_s5 + $0x38] sm:$0xff] %v685_v52   ;;  %v660_v55 = vpack.c.bf16 %v443_v53, %v442_v47  ;;  %v680_v56 = vpack.c.bf16 %v451_v54, %v450_v48 }
 0x101   : > { %688 = vst [vmem:[%s903_s5 + $0x10] sm:$0xff] %v660_v55   ;;  %692 = vst [vmem:[%s903_s5 + $0x30] sm:$0xff] %v680_v56  }
 0x102 PF: > { %s13_s12 = sadd.s32 1, %s775_s12  }
 0x103   : > { %p10_p4 = scmp.ge.s32.totalorder %s13_s12, 4  }
 0x105   :  { %12 = sbr.rel (!%p10_p4) target bundleno = 1 (0x1), region = 65 }

// kernel: cmg_autoencoder_forward.5
= control target key start
LH: loop header
LB: loop body
LE: loop exit
PB: predicated region body
PF: predicated region fallthrough
CT: control target
= control target key end

     0   :  { %s527_s9 = smov 0   ;;  %s624_s0 = inlined_call_operand.vmem [shape: bf16[256,128], index: 0, kind: input, shape index: {}]   ;;  %s625_s1 = inlined_call_operand.vmem [shape: f32[128,128], index: 1, kind: input, shape index: {}]   ;;  %s626_s2 = inlined_call_operand.vmem [shape: f32[256,128], index: 2, kind: output, shape index: {}]  }
   0x1 LB: > { %s405_s10 = sadd.s32 4294967295, %s510_s9   ;;  %p409_p0 = scmp.ge.s32.totalorder %s510_s9, 1  ;;  %s510_s9 = sphi %s527_s9, %s12_s9  }
   0x2   : > { %p113_p1 = scmp.lt.s32.totalorder %s510_s9, 3 }
   0x4   : > { %p114_p2 = pnand %p409_p0, %p113_p1 }
   0x5   : > { %s410_s17 = sshll.u32 (!%p114_p2), %s405_s10, 4 }
   0x6   : > { %117 = sbr.rel (%p114_p2) target bundleno = 254 (0xfe), region = 28  ;;  %p136_p3 = scmp.lt.s32.totalorder (!%p114_p2), %s410_s17, 31 }
   0xb   : > { %v178_v0 = vld [vmem:[%s625_s1 + $0x70] sm:$0xff]  ;;  %v179_v1 = vld [vmem:[%s625_s1 + $0x78] sm:$0xff]  ;;  %v176_v2 = vld [vmem:[%s625_s1 + $0x60] sm:$0xff]  ;;  %s628_s17 = smov (!%p136_p3, %s410_s17), 31 }
   0xc   : > { %v187_v3 = vpack.c.bf16 %v179_v1, %v178_v0  ;;  %v177_v4 = vld [vmem:[%s625_s1 + $0x68] sm:$0xff]  ;;  %v174_v6 = vld [vmem:[%s625_s1 + $0x50] sm:$0xff]  ;;  %v175_v7 = vld [vmem:[%s625_s1 + $0x58] sm:$0xff]  ;;  %s411_s24 = sshll.u32 %s628_s17, 2  ;;  %s413_s22 = sshll.u32 %s628_s17, 3 }
   0xd   : > { %v186_v5 = vpack.c.bf16 %v177_v4, %v176_v2  ;;  %v185_v8 = vpack.c.bf16 %v175_v7, %v174_v6  ;;  %v172_v9 = vld [vmem:[%s625_s1 + $0x40] sm:$0xff]  ;;  %v173_v10 = vld [vmem:[%s625_s1 + $0x48] sm:$0xff]  ;;  %s565_s3 = scalar_lea.vmem %s624_s0, %s411_s24  ;;  %v170_v14 = vld [vmem:[%s625_s1 + $0x30] sm:$0xff]  ;;  %s603_s25 = scalar_lea.vmem %s626_s2, %s413_s22 }
   0xe   : > { %440 = vmatprep.subr.bf16.mxu0 %v187_v3  ;;  %472 = vmatprep.subr.bf16.mxu1 %v187_v3  ;;  %v496_v11 = vld [vmem:[%s565_s3] sm:$0xff]   ;;  %v184_v13 = vpack.c.bf16 %v173_v10, %v172_v9  ;;  %v171_v15 = vld [vmem:[%s625_s1 + $0x38] sm:$0xff]  ;;  %v169_v18 = vld [vmem:[%s625_s1 + $0x28] sm:$0xff] }
   0xf   : > { %441 = vmatpush3.bf16.msra.mxu0 %v187_v3  ;;  %480 = vmatpush3.bf16.msra.mxu1 %v187_v3  ;;  %v497_v12 = vld [vmem:[%s565_s3 + $0x20] sm:$0xff]   ;;  %v183_v16 = vpack.c.bf16 %v171_v15, %v170_v14  ;;  %v166_v20 = vld [vmem:[%s625_s1 + $0x10] sm:$0xff]  ;;  %v167_v21 = vld [vmem:[%s625_s1 + $0x18] sm:$0xff] }
  0x10   : > { %442 = vmatprep.subr.bf16.mxu0 %v186_v5  ;;  %473 = vmatprep.subr.bf16.mxu1 %v186_v5  ;;  %v168_v17 = vld [vmem:[%s625_s1 + $0x20] sm:$0xff]  ;;  %v181_v22 = vpack.c.bf16 %v167_v21, %v166_v20  ;;  %v165_v24 = vld [vmem:[%s625_s1 + $0x8] sm:$0xff]  ;;  %v500_v28 = vld [vmem:[%s565_s3 + $0x10] sm:$0xff]  }
  0x11   : > { %456 = vmatprep.mubr.bf16.mxu0 %v496_v11  ;;  %464 = vmatprep.mubr.bf16.mxu1 %v497_v12  ;;  %v182_v19 = vpack.c.bf16 %v169_v18, %v168_v17  ;;  %v164_v23 = vld [vmem:[%s625_s1] sm:$0xff]  ;;  %v498_v26 = vld [vmem:[%s565_s3 + $0x8] sm:$0xff]   ;;  %v501_v29 = vld [vmem:[%s565_s3 + $0x30] sm:$0xff]  }
  0x12   : > { %v180_v25 = vpack.c.bf16 %v165_v24, %v164_v23  ;;  %v499_v27 = vld [vmem:[%s565_s3 + $0x28] sm:$0xff]   ;;  %v502_v30 = vld [vmem:[%s565_s3 + $0x18] sm:$0xff]  }
  0x13   : > { %443 = vmatpush3.bf16.msra.mxu0 %v186_v5  ;;  %481 = vmatpush3.bf16.msra.mxu1 %v186_v5  ;;  %v503_v31 = vld [vmem:[%s565_s3 + $0x38] sm:$0xff]  }
  0x14   : > { %444 = vmatprep.subr.bf16.mxu0 %v185_v8  ;;  %474 = vmatprep.subr.bf16.mxu1 %v185_v8 }
  0x17   : > { %445 = vmatpush3.bf16.msra.mxu0 %v185_v8  ;;  %482 = vmatpush3.bf16.msra.mxu1 %v185_v8 }
  0x18   : > { %446 = vmatprep.subr.bf16.mxu0 %v184_v13  ;;  %475 = vmatprep.subr.bf16.mxu1 %v184_v13 }
  0x1b   : > { %447 = vmatpush3.bf16.msra.mxu0 %v184_v13  ;;  %483 = vmatpush3.bf16.msra.mxu1 %v184_v13 }
  0x1c   : > { %448 = vmatprep.subr.bf16.mxu0 %v183_v16  ;;  %476 = vmatprep.subr.bf16.mxu1 %v183_v16 }
  0x1f   : > { %449 = vmatpush3.bf16.msra.mxu0 %v183_v16  ;;  %484 = vmatpush3.bf16.msra.mxu1 %v183_v16 }
  0x20   : > { %450 = vmatprep.subr.bf16.mxu0 %v182_v19  ;;  %477 = vmatprep.subr.bf16.mxu1 %v182_v19 }
  0x23   : > { %451 = vmatpush3.bf16.msra.mxu0 %v182_v19  ;;  %485 = vmatpush3.bf16.msra.mxu1 %v182_v19 }
  0x24   : > { %452 = vmatprep.subr.bf16.mxu0 %v181_v22  ;;  %478 = vmatprep.subr.bf16.mxu1 %v181_v22 }
  0x27   : > { %453 = vmatpush3.bf16.msra.mxu0 %v181_v22  ;;  %486 = vmatpush3.bf16.msra.mxu1 %v181_v22 }
  0x28   : > { %454 = vmatprep.subr.bf16.mxu0 %v180_v25  ;;  %479 = vmatprep.subr.bf16.mxu1 %v180_v25 }
  0x2b   : > { %455 = vmatpush3.bf16.msra.mxu0 %v180_v25  ;;  %487 = vmatpush3.bf16.msra.mxu1 %v180_v25 }
  0x2e   : > { %457 = vmatmul.mubr.bf16.vlgmr.msra.gmra.mxu0 %v498_v26  ;;  %465 = vmatmul.mubr.bf16.vlgmr.msra.gmra.mxu1 %v499_v27 }
  0x2f   : > { %460 = vmatprep.mubr.bf16.mxu0 %v500_v28  ;;  %468 = vmatprep.mubr.bf16.mxu1 %v501_v29 }
  0x36   : > { %461 = vmatmul.mubr.bf16.gmra.mxu0 %v502_v30  ;;  %469 = vmatmul.mubr.bf16.gmra.mxu1 %v503_v31 }
  0xee   : > { %v458_v32 = vpop.f32.mrf.mxu0  ;;  %v466_v33 = vpop.f32.mrf.mxu1 }
  0xef   : > { %335 = vst [vmem:[%s603_s25 + $0x10] sm:$0xff] %v458_v32  ;;  %343 = vst [vmem:[%s603_s25 + $0x50] sm:$0xff] %v466_v33 }
  0xf0   : > { %v270_v34 = vpop.f32.mrf.mxu0  ;;  %v302_v35 = vpop.f32.mrf.mxu1 }
  0xf1   : > { %333 = vst [vmem:[%s603_s25] sm:$0xff] %v270_v34  ;;  %341 = vst [vmem:[%s603_s25 + $0x40] sm:$0xff] %v302_v35 }
  0xf2   : > { %v459_v36 = vpop.f32.mrf.mxu0  ;;  %v467_v37 = vpop.f32.mrf.mxu1 }
  0xf3   : > { %336 = vst [vmem:[%s603_s25 + $0x18] sm:$0xff] %v459_v36  ;;  %344 = vst [vmem:[%s603_s25 + $0x58] sm:$0xff] %v467_v37 }
  0xf4   : > { %v273_v38 = vpop.f32.mrf.mxu0  ;;  %v305_v39 = vpop.f32.mrf.mxu1 }
  0xf5   : > { %334 = vst [vmem:[%s603_s25 + $0x8] sm:$0xff] %v273_v38  ;;  %342 = vst [vmem:[%s603_s25 + $0x48] sm:$0xff] %v305_v39 }
  0xf6   : > { %v462_v40 = vpop.f32.mrf.mxu0  ;;  %v470_v41 = vpop.f32.mrf.mxu1 }
  0xf7   : > { %339 = vst [vmem:[%s603_s25 + $0x30] sm:$0xff] %v462_v40  ;;  %347 = vst [vmem:[%s603_s25 + $0x70] sm:$0xff] %v470_v41 }
  0xf8   : > { %v286_v42 = vpop.f32.mrf.mxu0  ;;  %v318_v43 = vpop.f32.mrf.mxu1 }
  0xf9   : > { %337 = vst [vmem:[%s603_s25 + $0x20] sm:$0xff] %v286_v42  ;;  %345 = vst [vmem:[%s603_s25 + $0x60] sm:$0xff] %v318_v43 }
  0xfa   : > { %v463_v44 = vpop.f32.mrf.mxu0  ;;  %v471_v45 = vpop.f32.mrf.mxu1 }
  0xfb   : > { %340 = vst [vmem:[%s603_s25 + $0x38] sm:$0xff] %v463_v44  ;;  %348 = vst [vmem:[%s603_s25 + $0x78] sm:$0xff] %v471_v45 }
  0xfc   : > { %v289_v46 = vpop.f32.mrf.mxu0  ;;  %v321_v47 = vpop.f32.mrf.mxu1 }
  0xfd   : > { %338 = vst [vmem:[%s603_s25 + $0x28] sm:$0xff] %v289_v46  ;;  %346 = vst [vmem:[%s603_s25 + $0x68] sm:$0xff] %v321_v47 }
  0xfe PF: > { %s12_s9 = sadd.s32 1, %s510_s9  }
  0xff   : > { %p9_p4 = scmp.ge.s32.totalorder %s12_s9, 4  }
 0x101   :  { %11 = sbr.rel (!%p9_p4) target bundleno = 1 (0x1), region = 58 }

// kernel: cmg_autoencoder_forward.4
= control target key start
LH: loop header
LB: loop body
LE: loop exit
PB: predicated region body
PF: predicated region fallthrough
CT: control target
= control target key end

     0   :  { %s2980_s24 = smov 0   ;;  %s3684_s0 = inlined_call_operand.vmem [shape: bf16[256,256], index: 0, kind: input, shape index: {}]   ;;  %s3685_s1 = inlined_call_operand.vmem [shape: bf16[256,128], index: 1, kind: input, shape index: {}]   ;;  %s3686_s2 = inlined_call_operand.vmem [shape: f32[256,1], index: 2, kind: input, shape index: {}]   ;;  %s3687_s3 = inlined_call_operand.vmem [shape: bf16[256,128], index: 3, kind: input, shape index: {}]   ;;  %s3688_s4 = inlined_call_operand.vmem [shape: f32[1,128], index: 4, kind: input, shape index: {}]   ;;  %s3689_s5 = inlined_call_operand.vmem [shape: f32[128,128], index: 5, kind: input, shape index: {}]   ;;  %s3690_s6 = inlined_call_operand.vmem [shape: f32[1,128], index: 6, kind: input, shape index: {}]   ;;  %s3691_s7 = inlined_call_operand.vmem [shape: f32[128,128], index: 7, kind: output, shape index: {}]  }
   0x1 LB: > { %s2986_s25 = sadd.s32 4294967295, %s2933_s24   ;;  %p2311_p0 = scmp.ge.s32.totalorder %s2933_s24, 1  ;;  %s2933_s24 = sphi %s2980_s24, %s17_s24  }
   0x2   : > { %p245_p1 = scmp.lt.s32.totalorder %s2933_s24, 3 }
   0x4   : > { %p246_p2 = pnand %p2311_p0, %p245_p1 }
   0x6   : > { %249 = sbr.rel (%p246_p2) target bundleno = 1575 (0x627), region = 48 }
   0xb   : > { %s2312_s26 = sshll.u32 %s2986_s25, 4  ;;  %p2317_p4 = scmp.ne.s32.totalorder %s2986_s25, 0 }
   0xc   : > { %p279_p3 = scmp.lt.s32.totalorder %s2312_s26, 31 }
   0xd   : > { %296 = sbr.rel (%p2317_p4) target bundleno = 43 (0x2b), region = 52 }
   0xe   : > { %s3705_s26 = smov (!%p279_p3, %s2312_s26), 31 }
   0xf   : > { %s2397_s27 = sshll.u32 %s3705_s26, 3 }
  0x10   : > { %s2994_s30 = scalar_lea.vmem %s3684_s0, %s2397_s27  ;;  %s2999_s10 = scalar_lea.vmem %s3686_s2, %s2397_s27 }
  0x12   : > { %v2935_v0 = vmov 0.0  }
  0x13   : > { %297 = vst [vmem:[#allocation2 + $0x30] sm:$0xff] %v2935_v0  ;;  %298 = vst [vmem:[#allocation2] sm:$0xff] %v2935_v0 }
  0x14   : > { %299 = vst [vmem:[#allocation2 + $0x58] sm:$0xff] %v2935_v0  ;;  %300 = vst [vmem:[#allocation2 + $0x18] sm:$0xff] %v2935_v0 }
  0x15   : > { %301 = vst [vmem:[#allocation2 + $0x50] sm:$0xff] %v2935_v0  ;;  %302 = vst [vmem:[#allocation2 + $0x68] sm:$0xff] %v2935_v0 }
  0x16   : > { %303 = vst [vmem:[#allocation2 + $0x8] sm:$0xff] %v2935_v0  ;;  %304 = vst [vmem:[#allocation2 + $0x48] sm:$0xff] %v2935_v0 }
  0x17   : > { %305 = vst [vmem:[#allocation2 + $0x40] sm:$0xff] %v2935_v0  ;;  %306 = vst [vmem:[#allocation2 + $0x20] sm:$0xff] %v2935_v0 }
  0x18   : > { %307 = vst [vmem:[#allocation2 + $0x10] sm:$0xff] %v2935_v0  ;;  %308 = vst [vmem:[#allocation2 + $0x38] sm:$0xff] %v2935_v0 }
  0x19   : > { %309 = vst [vmem:[#allocation2 + $0x60] sm:$0xff] %v2935_v0  ;;  %310 = vst [vmem:[#allocation2 + $0x70] sm:$0xff] %v2935_v0 }
  0x1a   : > { %311 = vst [vmem:[#allocation2 + $0x78] sm:$0xff] %v2935_v0  ;;  %312 = vst [vmem:[#allocation2 + $0x28] sm:$0xff] %v2935_v0 }
  0x1b   : > { %313 = vst [vmem:[#allocation3 + $0x28] sm:$0xff] %v2935_v0  ;;  %314 = vst [vmem:[#allocation3 + $0x68] sm:$0xff] %v2935_v0 }
  0x1c   : > { %315 = vst [vmem:[#allocation3 + $0x10] sm:$0xff] %v2935_v0  ;;  %316 = vst [vmem:[#allocation3 + $0x40] sm:$0xff] %v2935_v0 }
  0x1d   : > { %317 = vst [vmem:[#allocation3 + $0x48] sm:$0xff] %v2935_v0  ;;  %318 = vst [vmem:[#allocation3 + $0x30] sm:$0xff] %v2935_v0 }
  0x1e   : > { %319 = vst [vmem:[#allocation3 + $0x70] sm:$0xff] %v2935_v0  ;;  %320 = vst [vmem:[#allocation3 + $0x38] sm:$0xff] %v2935_v0 }
  0x1f   : > { %321 = vst [vmem:[#allocation3 + $0x20] sm:$0xff] %v2935_v0  ;;  %322 = vst [vmem:[#allocation3 + $0x78] sm:$0xff] %v2935_v0 }
  0x20   : > { %323 = vst [vmem:[#allocation3 + $0x18] sm:$0xff] %v2935_v0  ;;  %324 = vst [vmem:[#allocation3 + $0x58] sm:$0xff] %v2935_v0 }
  0x21   : > { %325 = vst [vmem:[#allocation3] sm:$0xff] %v2935_v0  ;;  %326 = vst [vmem:[#allocation3 + $0x8] sm:$0xff] %v2935_v0 }
  0x22   : > { %327 = vst [vmem:[#allocation3 + $0x60] sm:$0xff] %v2935_v0  ;;  %328 = vst [vmem:[#allocation3 + $0x50] sm:$0xff] %v2935_v0 }
  0x23   : > { %329 = vst [vmem:[#allocation4 + $0x8] sm:$0xff] %v2935_v0  ;;  %330 = vst [vmem:[#allocation4] sm:$0xff] %v2935_v0 }
  0x24   : > { %331 = vst [vmem:[#allocation4 + $0x48] sm:$0xff] %v2935_v0  ;;  %332 = vst [vmem:[#allocation4 + $0x60] sm:$0xff] %v2935_v0 }
  0x25   : > { %333 = vst [vmem:[#allocation4 + $0x68] sm:$0xff] %v2935_v0  ;;  %334 = vst [vmem:[#allocation4 + $0x18] sm:$0xff] %v2935_v0 }
  0x26   : > { %335 = vst [vmem:[#allocation4 + $0x10] sm:$0xff] %v2935_v0  ;;  %336 = vst [vmem:[#allocation4 + $0x38] sm:$0xff] %v2935_v0 }
  0x27   : > { %337 = vst [vmem:[#allocation4 + $0x40] sm:$0xff] %v2935_v0  ;;  %338 = vst [vmem:[#allocation4 + $0x28] sm:$0xff] %v2935_v0 }
  0x28   : > { %339 = vst [vmem:[#allocation4 + $0x70] sm:$0xff] %v2935_v0  ;;  %340 = vst [vmem:[#allocation4 + $0x20] sm:$0xff] %v2935_v0 }
  0x29   : > { %341 = vst [vmem:[#allocation4 + $0x58] sm:$0xff] %v2935_v0  ;;  %342 = vst [vmem:[#allocation4 + $0x30] sm:$0xff] %v2935_v0 }
  0x2a   : > { %343 = vst [vmem:[#allocation4 + $0x50] sm:$0xff] %v2935_v0  ;;  %344 = vst [vmem:[#allocation4 + $0x78] sm:$0xff] %v2935_v0 }
  0x2b PF: > { %v2797_v1 = vld [vmem:[%s3687_s3 + $0x78] sm:$0xff]   ;;  %v2936_v3 = vmov 0   ;;  %v2799_v4 = vld [vmem:[%s3687_s3 + $0x70] sm:$0xff]   ;;  %v2801_v6 = vld [vmem:[%s3687_s3 + $0x68] sm:$0xff]   ;;  %p2377_p5 = scmp.ne.s32.totalorder %s2986_s25, 1 }
  0x2c   : > { %v2798_v2 = vld [vmem:[%s3687_s3 + $0x38] sm:$0xff]   ;;  %2795 = vset.pattern.permute.xlu0 %v2936_v3  ;;  %2796 = vset.pattern.permute.xlu1 %v2936_v3  ;;  %v2800_v5 = vld [vmem:[%s3687_s3 + $0x30] sm:$0xff]   ;;  %v2802_v7 = vld [vmem:[%s3687_s3 + $0x28] sm:$0xff]  }
  0x2d   : > { %2398 = vmatprep.subr.bf16.mxu0 %v2797_v1  ;;  %v2803_v8 = vld [vmem:[%s3687_s3 + $0x60] sm:$0xff]   ;;  %v2805_v10 = vld [vmem:[%s3687_s3 + $0x58] sm:$0xff]   ;;  %v2807_v12 = vld [vmem:[%s3687_s3 + $0x50] sm:$0xff]  }
  0x2e   : > { %2399 = vmatpush3.bf16.msra.mxu0 %v2798_v2  ;;  %v2804_v9 = vld [vmem:[%s3687_s3 + $0x20] sm:$0xff]   ;;  %v2806_v11 = vld [vmem:[%s3687_s3 + $0x18] sm:$0xff]   ;;  %v2808_v14 = vld [vmem:[%s3687_s3 + $0x10] sm:$0xff]  }
  0x2f   : > { %2400 = vmatprep.subr.bf16.mxu0 %v2799_v4  ;;  %v3036_v13 = vld [vmem:[%s2994_s30 + $0x4] ss:$8 sps:$4 sm:$0xff]   ;;  %v680_v18 = vld [vmem:[%s2999_s10 + $0x70] sm:$0xff]  ;;  %v681_v19 = vld [vmem:[%s2999_s10 + $0x78] sm:$0xff] }
  0x30   : > { %601 = vmatprep.mubr.bf16.mxu0 %v3036_v13  ;;  %v2809_v15 = vld [vmem:[%s3687_s3 + $0x48] sm:$0xff]   ;;  %v2811_v17 = vld [vmem:[%s3687_s3 + $0x40] sm:$0xff]   ;;  %754 = vperm.xlu0 %2795, %v680_v18   ;;  %v676_v24 = vld [vmem:[%s2999_s10 + $0x50] sm:$0xff] }
  0x31   : > { %v2810_v16 = vld [vmem:[%s3687_s3 + $0x8] sm:$0xff]   ;;  %v678_v20 = vld [vmem:[%s2999_s10 + $0x60] sm:$0xff]  ;;  %v3063_v25 = vld [vmem:[%s2994_s30 + $0x14] ss:$8 sps:$4 sm:$0xff]  }
  0x32   : > { %2401 = vmatpush3.bf16.msra.mxu0 %v2800_v5  ;;  %v2812_v21 = vld [vmem:[%s3687_s3] sm:$0xff]   ;;  %744 = vperm.xlu1 %2796, %v678_v20   ;;  %v679_v22 = vld [vmem:[%s2999_s10 + $0x68] sm:$0xff]  ;;  %v677_v26 = vld [vmem:[%s2999_s10 + $0x58] sm:$0xff] }
  0x33   : > { %2402 = vmatprep.subr.bf16.mxu0 %v2801_v6  ;;  %v3059_v23 = vld [vmem:[%s2994_s30] ss:$8 sps:$4 sm:$0xff]   ;;  %v3071_v29 = vld [vmem:[%s2994_s30 + $0x10] ss:$8 sps:$4 sm:$0xff]   ;;  %v3075_v31 = vld [vmem:[%s2994_s30 + $0x24] ss:$8 sps:$4 sm:$0xff]  }
  0x34   : > { %759 = vperm.xlu0 %2795, %v681_v19   ;;  %v674_v27 = vld [vmem:[%s2999_s10 + $0x40] sm:$0xff]  ;;  %v675_v28 = vld [vmem:[%s2999_s10 + $0x48] sm:$0xff]  ;;  %v672_v30 = vld [vmem:[%s2999_s10 + $0x30] sm:$0xff] }
  0x35   : > { %v673_v32 = vld [vmem:[%s2999_s10 + $0x38] sm:$0xff]  ;;  %v670_v33 = vld [vmem:[%s2999_s10 + $0x20] sm:$0xff]  ;;  %v671_v34 = vld [vmem:[%s2999_s10 + $0x28] sm:$0xff] }
  0x36   : > { %2403 = vmatpush3.bf16.msra.mxu0 %v2802_v7  ;;  %749 = vperm.xlu1 %2796, %v679_v22   ;;  %v3083_v35 = vld [vmem:[%s2994_s30 + $0x20] ss:$8 sps:$4 sm:$0xff]   ;;  %v668_v36 = vld [vmem:[%s2999_s10 + $0x10] sm:$0xff]  ;;  %v669_v38 = vld [vmem:[%s2999_s10 + $0x18] sm:$0xff] }
  0x37   : > { %2404 = vmatprep.subr.bf16.mxu0 %v2803_v8  ;;  %v3087_v37 = vld [vmem:[%s2994_s30 + $0x34] ss:$8 sps:$4 sm:$0xff]   ;;  %v666_v39 = vld [vmem:[%s2999_s10] sm:$0xff]  ;;  %v667_v40 = vld [vmem:[%s2999_s10 + $0x8] sm:$0xff]  ;;  %s2351_s10 = sshll.u32 %s2986_s25, 7 }
  0x38   : > { %734 = vperm.xlu0 %2795, %v676_v24   ;;  %v3095_v41 = vld [vmem:[%s2994_s30 + $0x30] ss:$8 sps:$4 sm:$0xff]   ;;  %v3098_v42 = vld [vmem:[%s2994_s30 + $0x44] ss:$8 sps:$4 sm:$0xff]   ;;  %v3103_v43 = vld [vmem:[%s2994_s30 + $0x40] ss:$8 sps:$4 sm:$0xff]  }
  0x39   : > { %v3106_v44 = vld [vmem:[%s2994_s30 + $0x54] ss:$8 sps:$4 sm:$0xff]   ;;  %v3111_v45 = vld [vmem:[%s2994_s30 + $0x50] ss:$8 sps:$4 sm:$0xff]   ;;  %v3114_v46 = vld [vmem:[%s2994_s30 + $0x64] ss:$8 sps:$4 sm:$0xff]  }
  0x3a   : > { %2405 = vmatpush3.bf16.msra.mxu0 %v2804_v9  ;;  %739 = vperm.xlu1 %2796, %v677_v26   ;;  %v3119_v47 = vld [vmem:[%s2994_s30 + $0x60] ss:$8 sps:$4 sm:$0xff]   ;;  %v3122_v48 = vld [vmem:[%s2994_s30 + $0x74] ss:$8 sps:$4 sm:$0xff]   ;;  %v3127_v49 = vld [vmem:[%s2994_s30 + $0x70] ss:$8 sps:$4 sm:$0xff]  }
  0x3b   : > { %2406 = vmatprep.subr.bf16.mxu0 %v2805_v10  ;;  %3696 = vst [vmem:[#allocation5_spill] sm:$0xff] %v3119_v47  ;;  %3697 = vst [vmem:[#allocation6_spill] sm:$0xff] %v3122_v48  ;;  %s818_s26 = sshra.s32 %s2351_s10, 3 }
  0x3c   : > { %724 = vperm.xlu0 %2795, %v674_v27   ;;  %3698 = vst [vmem:[#allocation7_spill] sm:$0xff] %v3127_v49  ;;  %s2352_s27 = sshll.u32 %s818_s26, 2 }
  0x3d   : > { %s821_s8 = scalar_lea.vmem %s3685_s1, %s2352_s27 }
  0x3e   : > { %2407 = vmatpush3.bf16.msra.mxu0 %v2806_v11  ;;  %729 = vperm.xlu1 %2796, %v675_v28   ;;  %v2837_v50 = vld [vmem:[%s821_s8] sm:$0xff]   ;;  %v2838_v51 = vld [vmem:[%s821_s8 + $0x8] sm:$0xff]   ;;  %v2839_v52 = vld [vmem:[%s821_s8 + $0x10] sm:$0xff]  }
  0x3f   : > { %2408 = vmatprep.subr.bf16.mxu0 %v2807_v12  ;;  %v2840_v53 = vld [vmem:[%s821_s8 + $0x18] sm:$0xff]   ;;  %v2841_v54 = vld [vmem:[%s821_s8 + $0x20] sm:$0xff]   ;;  %v2842_v55 = vld [vmem:[%s821_s8 + $0x28] sm:$0xff]  }
  0x40   : > { %714 = vperm.xlu0 %2795, %v672_v30   ;;  %v2843_v56 = vld [vmem:[%s821_s8 + $0x30] sm:$0xff]   ;;  %v2844_v57 = vld [vmem:[%s821_s8 + $0x38] sm:$0xff]  }
  0x42   : > { %2409 = vmatpush3.bf16.msra.mxu0 %v2808_v14  ;;  %719 = vperm.xlu1 %2796, %v673_v32  }
  0x43   : > { %2410 = vmatprep.subr.bf16.mxu0 %v2809_v15 }
  0x44   : > { %704 = vperm.xlu0 %2795, %v670_v33  }
  0x46   : > { %2411 = vmatpush3.bf16.msra.mxu0 %v2810_v16  ;;  %709 = vperm.xlu1 %2796, %v671_v34   ;;  %v3165_v16 = vld [vmem:[%s3688_s4] ss:$0 sm:$0xff] }
  0x47   : > { %2412 = vmatprep.subr.bf16.mxu0 %v2811_v17 }
  0x48   : > { %694 = vperm.xlu0 %2795, %v668_v36  }
  0x4a   : > { %2413 = vmatpush3.bf16.msra.mxu0 %v2812_v21  ;;  %699 = vperm.xlu1 %2796, %v669_v38  }
  0x4c   : > { %684 = vperm.xlu0 %2795, %v666_v39  }
  0x4d   : > { %602 = vmatmul.mubr.bf16.vlgmr.msra.gmra.mxu0 %v3059_v23 }
  0x4e   : > { %609 = vmatprep.mubr.bf16.mxu0 %v3063_v25  ;;  %689 = vperm.xlu1 %2796, %v667_v40  }
  0x55   : > { %610 = vmatmul.mubr.bf16.gmra.mxu0 %v3071_v29 }
  0x56   : > { %617 = vmatprep.mubr.bf16.mxu0 %v3075_v31 }
  0x5d   : > { %618 = vmatmul.mubr.bf16.gmra.mxu0 %v3083_v35 }
  0x5e   : > { %625 = vmatprep.mubr.bf16.mxu0 %v3087_v37 }
  0x65   : > { %626 = vmatmul.mubr.bf16.gmra.mxu0 %v3095_v41 }
  0x66   : > { %633 = vmatprep.mubr.bf16.mxu0 %v3098_v42 }
  0x6a   : > { %910 = vxpose.xlu0.c.b16.start [1/8] %v2837_v50, 128 }
  0x6d   : > { %634 = vmatmul.mubr.bf16.gmra.mxu0 %v3103_v43 }
  0x6e   : > { %641 = vmatprep.mubr.bf16.mxu0 %v3106_v44  ;;  %911 = vxpose.xlu0.c.b16.cont [2/8] %v2838_v51, 128 }
  0x72   : > { %912 = vxpose.xlu0.c.b16.cont [3/8] %v2839_v52, 128 }
  0x75   : > { %642 = vmatmul.mubr.bf16.gmra.mxu0 %v3111_v45 }
  0x76   : > { %649 = vmatprep.mubr.bf16.mxu0 %v3114_v46  ;;  %913 = vxpose.xlu0.c.b16.cont [4/8] %v2840_v53, 128 }
  0x7a   : > { %914 = vxpose.xlu0.c.b16.cont [5/8] %v2841_v54, 128 }
  0x7d   : > { %650 = vmatmul.mubr.bf16.gmra.mxu0 %v3119_v47 }
  0x7e   : > { %657 = vmatprep.mubr.bf16.mxu0 %v3122_v48  ;;  %915 = vxpose.xlu0.c.b16.cont [6/8] %v2842_v55, 128 }
  0x82   : > { %916 = vxpose.xlu0.c.b16.cont [7/8] %v2843_v56, 128 }
  0x85   : > { %658 = vmatmul.mubr.bf16.gmra.mxu0 %v3127_v49 }
  0x86   : > { %917 = vxpose.xlu0.c.b16.end [8/8] %v2844_v57, 128 }
  0xab   : > { %v3134_v58 = vpop.permute.xlu0 %754 }
  0xad   : > { %v3146_v1 = vpop.permute.xlu1 %744 }
  0xaf   : > { %v3136_v59 = vpop.permute.xlu0 %759 }
  0xb1   : > { %v3148_v3 = vpop.permute.xlu1 %749 }
  0xb3   : > { %v3138_v60 = vpop.permute.xlu0 %734 }
  0xb5   : > { %v3154_v5 = vpop.permute.xlu1 %739 }
  0xb7   : > { %v3140_v61 = vpop.permute.xlu0 %724 }
  0xb9   : > { %v3156_v6 = vpop.permute.xlu1 %729 }
  0xbb   : > { %v3142_v62 = vpop.permute.xlu0 %714 }
  0xbd   : > { %v3158_v7 = vpop.permute.xlu1 %719 }
  0xbf   : > { %v3144_v63 = vpop.permute.xlu0 %704 }
  0xc1   : > { %v3160_v8 = vpop.permute.xlu1 %709 }
  0xc3   : > { %v695_v0 = vpop.permute.xlu0 %694 }
  0xc5   : > { %v700_v10 = vpop.permute.xlu1 %699 }
  0xc7   : > { %v685_v2 = vpop.permute.xlu0 %684 }
  0xc9   : > { %v690_v18 = vpop.permute.xlu1 %689 }
  0xcc   : > { %v3150_v4 = vpop.trf.xlu0 }
  0xcd   : > { %3699 = vst [vmem:[#allocation8_spill] sm:$0xff] %v3150_v4  ;;  %2622 = vmatprep.mubr.bf16.mxu1 %v3150_v4  ;;  %2654 = vmatprep.mubr.bf16.mxu0 %v3150_v4 }
 0x10d   : > { %v2414_v9 = vpop.f32.mrf.mxu0 }
 0x10f   : > { %v2415_v11 = vpop.f32.mrf.mxu0 }
 0x110   : > { %v2416_v12 = vadd.f32 %v2415_v11, %v2414_v9 }
 0x111   : > { %v2417_v14 = vpop.f32.mrf.mxu0 }
 0x112   : > { %v762_v15 = vmul.f32 %v2416_v12, %v685_v2 }
 0x113   : > { %v2418_v17 = vpop.f32.mrf.mxu0 }
 0x114   : > { %v2419_v19 = vadd.f32 %v2418_v17, %v2417_v14  ;;  %v785_v21 = vadd.f32 %v3165_v16, %v762_v15 }
 0x115   : > { %v2420_v20 = vpop.f32.mrf.mxu0 }
 0x116   : > { %v763_v22 = vmul.f32 %v2419_v19, %v690_v18  ;;  %v801_v30 = vmax.f32 %v785_v21, 0.0 }
 0x117   : > { %v2421_v24 = vpop.f32.mrf.mxu0 }
 0x118   : > { %v786_v26 = vadd.f32 %v3165_v16, %v763_v22  ;;  %v2422_v27 = vadd.f32 %v2421_v24, %v2420_v20 }
 0x119   : > { %v2423_v28 = vpop.f32.mrf.mxu0 }
 0x11a   : > { %v802_v32 = vmax.f32 %v786_v26, 0.0  ;;  %v764_v33 = vmul.f32 %v2422_v27, %v695_v0 }
 0x11b   : > { %v2424_v34 = vpop.f32.mrf.mxu0 }
 0x11c   : > { %v2425_v36 = vadd.f32 %v2424_v34, %v2423_v28  ;;  %v3169_v38 = vpack.c.bf16 %v802_v32, %v801_v30  ;;  %v787_v40 = vadd.f32 %v3165_v16, %v764_v33 }
 0x11d   : > { %v3171_v39 = vpop.f32.mrf.mxu0 }
 0x11e   : > { %v765_v50 = vmul.f32 %v2425_v36, %v700_v10  ;;  %v803_v54 = vmax.f32 %v787_v40, 0.0 }
 0x11f   : > { %v3174_v51 = vpop.f32.mrf.mxu0 }
 0x120   : > { %v788_v52 = vadd.f32 %v3165_v16, %v765_v50 }
 0x121   : > { %v2429_v53 = vpop.f32.mrf.mxu0 }
 0x122   : > { %v804_v55 = vmax.f32 %v788_v52, 0.0 }
 0x123   : > { %v2430_v56 = vpop.f32.mrf.mxu0 }
 0x124   : > { %v3177_v57 = vpack.c.bf16 %v804_v55, %v803_v54 }
 0x125   : > { %v2432_v0 = vpop.f32.mrf.mxu0 }
 0x127   : > { %v2433_v2 = vpop.f32.mrf.mxu0 }
 0x129   : > { %v2435_v9 = vpop.f32.mrf.mxu0 }
 0x12b   : > { %v2436_v11 = vpop.f32.mrf.mxu0 }
 0x12d   : > { %v2438_v12 = vpop.f32.mrf.mxu0 }
 0x12f   : > { %v2439_v14 = vpop.f32.mrf.mxu0 }
 0x131   : > { %v2441_v15 = vpop.f32.mrf.mxu0 }
 0x133   : > { %v2442_v17 = vpop.f32.mrf.mxu0 }
 0x134   : > { %v2443_v49 = vadd.f32 %v2442_v17, %v2441_v15 }
 0x135   : > { %v2444_v18 = vpop.f32.mrf.mxu0 }
 0x137   : > { %v2445_v10 = vpop.f32.mrf.mxu0 }
 0x138   : > { %v2446_v54 = vadd.f32 %v2445_v10, %v2444_v18  ;;  %v2437_v18 = vadd.f32 %v2436_v11, %v2435_v9 }
 0x139   : > { %v2447_v19 = vpop.f32.mrf.mxu0 }
 0x13b   : > { %v2448_v20 = vpop.f32.mrf.mxu0 }
 0x13c   : > { %v2449_v36 = vadd.f32 %v2448_v20, %v2447_v19  ;;  %v772_v19 = vmul.f32 %v2446_v54, %v3138_v60  ;;  %v2434_v20 = vadd.f32 %v2433_v2, %v2432_v0  ;;  %v2431_v60 = vadd.f32 %v2430_v56, %v2429_v53  ;;  %v2847_v54 = vld [vmem:[%s3685_s1 + $0x70] sm:$0xff]  }
 0x13d   : > { %v2450_v21 = vpop.f32.mrf.mxu0 }
 0x13e   : > { %v773_v48 = vmul.f32 %v2449_v36, %v3154_v5  ;;  %v767_v0 = vmul.f32 %v2431_v60, %v3160_v8 }
 0x13f   : > { %v2451_v22 = vpop.f32.mrf.mxu0 }
 0x140   : > { %v2452_v32 = vadd.f32 %v2451_v22, %v2450_v21  ;;  %v2440_v22 = vadd.f32 %v2439_v14, %v2438_v12  ;;  %v796_v15 = vadd.f32 %v3165_v16, %v773_v48  ;;  %v768_v48 = vmul.f32 %v2434_v20, %v3142_v62  ;;  %v2859_v20 = vld [vmem:[%s3685_s1 + $0x40] sm:$0xff]  }
 0x141   : > { %v2453_v24 = vpop.f32.mrf.mxu0 }
 0x142   : > { %v774_v55 = vmul.f32 %v2452_v32, %v3146_v1  ;;  %v771_v1 = vmul.f32 %v2443_v49, %v3156_v6  ;;  %v812_v9 = vmax.f32 %v796_v15, 0.0  ;;  %v791_v11 = vadd.f32 %v3165_v16, %v768_v48  ;;  %v2856_v15 = vld [vmem:[%s3685_s1 + $0x10] sm:$0xff]  }
 0x143   : > { %v2454_v26 = vpop.f32.mrf.mxu0 }
 0x144   : > { %v2455_v28 = vadd.f32 %v2454_v26, %v2453_v24  ;;  %v769_v26 = vmul.f32 %v2437_v18, %v3158_v7  ;;  %v807_v32 = vmax.f32 %v791_v11, 0.0  ;;  %v846_v11 = vld [vmem:[#allocation2 + $0x40] sm:$0xff] }
 0x145   : > { %v2456_v27 = vpop.f32.mrf.mxu0 }
 0x146   : > { %v775_v40 = vmul.f32 %v2455_v28, %v3148_v3  ;;  %v797_v3 = vadd.f32 %v3165_v16, %v774_v55  ;;  %v792_v53 = vadd.f32 %v3165_v16, %v769_v26 }
 0x147   : > { %v2457_v30 = vpop.f32.mrf.mxu0 }
 0x148   : > { %v2458_v33 = vadd.f32 %v2457_v30, %v2456_v27  ;;  %v798_v47 = vadd.f32 %v3165_v16, %v775_v40  ;;  %v813_v12 = vmax.f32 %v797_v3, 0.0  ;;  %v794_v27 = vadd.f32 %v3165_v16, %v771_v1  ;;  %v2853_v3 = vld [vmem:[%s3685_s1 + $0x58] sm:$0xff]   ;;  %v2855_v1 = vld [vmem:[%s3685_s1 + $0x50] sm:$0xff]  }
 0x149   : > { %v2459_v34 = vpop.f32.mrf.mxu0  ;;  %v808_v62 = vmax.f32 %v792_v53, 0.0 }
 0x14a   : > { %v776_v50 = vmul.f32 %v2458_v33, %v3134_v58  ;;  %v814_v17 = vmax.f32 %v798_v47, 0.0  ;;  %v2428_v47 = vadd.f32 %v3174_v51, %v3171_v39  ;;  %v810_v7 = vmax.f32 %v794_v27, 0.0  ;;  %v842_v27 = vld [vmem:[#allocation2 + $0x50] sm:$0xff] }
 0x14b   : > { %v2460_v52 = vpop.f32.mrf.mxu0  ;;  %v790_v39 = vadd.f32 %v3165_v16, %v767_v0  ;;  %v857_v33 = vpack.c.bf16 %v808_v62, %v807_v32  ;;  %v849_v62 = vld [vmem:[#allocation2 + $0x38] sm:$0xff]  ;;  %v847_v32 = vld [vmem:[#allocation2 + $0x20] sm:$0xff] }
 0x14c   : > { %v2461_v4 = vadd.f32 %v2460_v52, %v2459_v34  ;;  %v799_v21 = vadd.f32 %v3165_v16, %v776_v50  ;;  %v860_v49 = vpack.c.bf16 %v814_v17, %v813_v12  ;;  %v766_v2 = vmul.f32 %v2428_v47, %v3144_v63  ;;  %v3205_v63 = vpop.trf.xlu0  ;;  %v2846_v52 = vld [vmem:[%s3685_s1 + $0x38] sm:$0xff]   ;;  %v2857_v17 = vld [vmem:[%s3685_s1 + $0x48] sm:$0xff]  }
 0x14d   : > { %v806_v8 = vmax.f32 %v790_v39, 0.0  ;;  %v845_v47 = vld [vmem:[#allocation2 + $0x48] sm:$0xff] }
 0x14e   : > { %v777_v24 = vmul.f32 %v2461_v4, %v3136_v59  ;;  %v815_v5 = vmax.f32 %v799_v21, 0.0  ;;  %v770_v59 = vmul.f32 %v2440_v22, %v3140_v61  ;;  %v795_v4 = vadd.f32 %v3165_v16, %v772_v19  ;;  %v2851_v21 = vld [vmem:[%s3685_s1 + $0x60] sm:$0xff]  }
 0x14f   : > { %v789_v30 = vadd.f32 %v3165_v16, %v766_v2  ;;  %v2852_v19 = vld [vmem:[%s3685_s1 + $0x20] sm:$0xff]  }
 0x150   : > { %v800_v58 = vadd.f32 %v3165_v16, %v777_v24  ;;  %v793_v61 = vadd.f32 %v3165_v16, %v770_v59  ;;  %v811_v6 = vmax.f32 %v795_v4, 0.0  ;;  %v3208_v40 = vpop.trf.xlu0  ;;  %v2845_v16 = vld [vmem:[%s3685_s1 + $0x78] sm:$0xff]   ;;  %v2850_v24 = vld [vmem:[%s3685_s1 + $0x28] sm:$0xff]   ;;  %v2860_v59 = vld [vmem:[%s3685_s1] sm:$0xff]   ;;  %v2937_v4 = vmov 1065369472  }
 0x151   : > { %v805_v34 = vmax.f32 %v789_v30, 0.0 }
 0x152   : > { %v816_v10 = vmax.f32 %v800_v58, 0.0  ;;  %v859_v56 = vpack.c.bf16 %v812_v9, %v811_v6  ;;  %v809_v28 = vmax.f32 %v793_v61, 0.0  ;;  %v2854_v58 = vld [vmem:[%s3685_s1 + $0x18] sm:$0xff]   ;;  %v843_v6 = vld [vmem:[#allocation2 + $0x68] sm:$0xff] }
 0x153   : > { %v856_v36 = vpack.c.bf16 %v806_v8, %v805_v34  ;;  %v852_v34 = vld [vmem:[#allocation2 + $0x78] sm:$0xff] }
 0x154   : > { %v861_v14 = vpack.c.bf16 %v816_v10, %v815_v5  ;;  %v858_v51 = vpack.c.bf16 %v810_v7, %v809_v28  ;;  %v3215_v50 = vpop.trf.xlu0  ;;  %v2858_v10 = vld [vmem:[%s3685_s1 + $0x8] sm:$0xff]   ;;  %v848_v7 = vld [vmem:[#allocation2 + $0x10] sm:$0xff] }
 0x156   : > { %2606 = vmatprep.subr.bf16.mxu1 %v861_v14 }
 0x157   : > { %2607 = vmatpush3.bf16.msra.mxu1 %v861_v14  ;;  %v844_v14 = vld [vmem:[#allocation2 + $0x8] sm:$0xff] }
 0x158   : > { %2608 = vmatprep.subr.bf16.mxu1 %v860_v49  ;;  %v3232_v55 = vpop.trf.xlu0 }
 0x15b   : > { %2609 = vmatpush3.bf16.msra.mxu1 %v860_v49 }
 0x15c   : > { %2610 = vmatprep.subr.bf16.mxu1 %v859_v56  ;;  %v3241_v22 = vpop.trf.xlu0 }
 0x15f   : > { %2611 = vmatpush3.bf16.msra.mxu1 %v859_v56 }
 0x160   : > { %2612 = vmatprep.subr.bf16.mxu1 %v858_v51  ;;  %v3253_v18 = vpop.trf.xlu0 }
 0x163   : > { %2613 = vmatpush3.bf16.msra.mxu1 %v858_v51 }
 0x164   : > { %2614 = vmatprep.subr.bf16.mxu1 %v857_v33  ;;  %v3266_v5 = vpop.trf.xlu0 }
 0x167   : > { %2615 = vmatpush3.bf16.msra.mxu1 %v857_v33 }
 0x168   : > { %2616 = vmatprep.subr.bf16.mxu1 %v856_v36 }
 0x16b   : > { %2617 = vmatpush3.bf16.msra.mxu1 %v856_v36 }
 0x16c   : > { %2618 = vmatprep.subr.bf16.mxu1 %v3177_v57 }
 0x16f   : > { %2619 = vmatpush3.bf16.msra.mxu1 %v3177_v57  ;;  %v2848_v57 = vld [vmem:[%s3685_s1 + $0x30] sm:$0xff]  }
 0x170   : > { %2620 = vmatprep.subr.bf16.mxu1 %v3169_v38 }
 0x173   : > { %2621 = vmatpush3.bf16.msra.mxu1 %v3169_v38  ;;  %v2849_v38 = vld [vmem:[%s3685_s1 + $0x68] sm:$0xff]  }
 0x174   : > { %2478 = vmatprep.subr.bf16.mxu1 %v2845_v16 }
 0x176   : > { %2623 = vmatmul.mubr.bf16.vlgmr.msra.gmra.mxu1 %v3205_v63 }
 0x177   : > { %2479 = vmatpush3.bf16.msra.mxu1 %v2846_v52  ;;  %2626 = vmatprep.mubr.bf16.mxu1 %v3208_v40  ;;  %v850_v52 = vld [vmem:[#allocation2 + $0x60] sm:$0xff] }
 0x178   : > { %2480 = vmatprep.subr.bf16.mxu1 %v2847_v54 }
 0x17b   : > { %2481 = vmatpush3.bf16.msra.mxu1 %v2848_v57 }
 0x17c   : > { %2482 = vmatprep.subr.bf16.mxu1 %v2849_v38  ;;  %v853_v38 = vld [vmem:[#allocation2 + $0x28] sm:$0xff] }
 0x17e   : > { %2627 = vmatmul.mubr.bf16.gmra.mxu1 %v3215_v50 }
 0x17f   : > { %2483 = vmatpush3.bf16.msra.mxu1 %v2850_v24  ;;  %2630 = vmatprep.mubr.bf16.mxu1 %v3232_v55 }
 0x180   : > { %2484 = vmatprep.subr.bf16.mxu1 %v2851_v21 }
 0x183   : > { %2485 = vmatpush3.bf16.msra.mxu1 %v2852_v19  ;;  %v851_v19 = vld [vmem:[#allocation2 + $0x70] sm:$0xff] }
 0x184   : > { %2486 = vmatprep.subr.bf16.mxu1 %v2853_v3 }
 0x186   : > { %2631 = vmatmul.mubr.bf16.gmra.mxu1 %v3241_v22 }
 0x187   : > { %2487 = vmatpush3.bf16.msra.mxu1 %v2854_v58  ;;  %2634 = vmatprep.mubr.bf16.mxu1 %v3253_v18 }
 0x188   : > { %2488 = vmatprep.subr.bf16.mxu1 %v2855_v1 }
 0x18b   : > { %2489 = vmatpush3.bf16.msra.mxu1 %v2856_v15 }
 0x18c   : > { %2490 = vmatprep.subr.bf16.mxu1 %v2857_v17 }
 0x18e   : > { %2635 = vmatmul.mubr.bf16.gmra.mxu1 %v3266_v5 }
 0x18f   : > { %2491 = vmatpush3.bf16.msra.mxu1 %v2858_v10  ;;  %1215 = vmatprep.mubr.bf16.mxu1 %v3036_v13  ;;  %v3700_v13 = vld [vmem:[#allocation5_spill] sm:$0xff] }
 0x190   : > { %2492 = vmatprep.subr.bf16.mxu1 %v2859_v20 }
 0x193   : > { %2493 = vmatpush3.bf16.msra.mxu1 %v2860_v59 }
 0x194   : > { %2766 = vmatprep.subr.bf16.mxu1 %v2937_v4 }
 0x196   : > { %1216 = vmatmul.mubr.bf16.vlgmr.msra.gmra.mxu1 %v3059_v23  ;;  %v3701_v23 = vld [vmem:[#allocation6_spill] sm:$0xff] }
 0x197   : > { %1223 = vmatprep.mubr.bf16.mxu1 %v3063_v25  ;;  %2774 = vmatpush3.bf16.msra.mxu1 %v2937_v4  ;;  %v3702_v25 = vld [vmem:[#allocation7_spill] sm:$0xff] }
 0x198   : > { %2767 = vmatprep.subr.bf16.mxu1 %v2937_v4 }
 0x19b   : > { %2775 = vmatpush3.bf16.msra.mxu1 %v2937_v4 }
 0x19c   : > { %2768 = vmatprep.subr.bf16.mxu1 %v2937_v4 }
 0x19e   : > { %1224 = vmatmul.mubr.bf16.gmra.mxu1 %v3071_v29  ;;  %v840_v29 = vld [vmem:[#allocation2 + $0x58] sm:$0xff] }
 0x19f   : > { %1231 = vmatprep.mubr.bf16.mxu1 %v3075_v31  ;;  %2776 = vmatpush3.bf16.msra.mxu1 %v2937_v4 }
 0x1a0   : > { %2769 = vmatprep.subr.bf16.mxu1 %v2937_v4 }
 0x1a3   : > { %2777 = vmatpush3.bf16.msra.mxu1 %v2937_v4 }
 0x1a4   : > { %2770 = vmatprep.subr.bf16.mxu1 %v2937_v4 }
 0x1a6   : > { %1232 = vmatmul.mubr.bf16.gmra.mxu1 %v3083_v35  ;;  %v838_v35 = vld [vmem:[#allocation2 + $0x30] sm:$0xff] }
 0x1a7   : > { %1239 = vmatprep.mubr.bf16.mxu1 %v3087_v37  ;;  %2778 = vmatpush3.bf16.msra.mxu1 %v2937_v4 }
 0x1a8   : > { %2771 = vmatprep.subr.bf16.mxu1 %v2937_v4 }
 0x1ab   : > { %2779 = vmatpush3.bf16.msra.mxu1 %v2937_v4 }
 0x1ac   : > { %2772 = vmatprep.subr.bf16.mxu1 %v2937_v4 }
 0x1ae   : > { %1240 = vmatmul.mubr.bf16.gmra.mxu1 %v3095_v41 }
 0x1af   : > { %1247 = vmatprep.mubr.bf16.mxu1 %v3098_v42  ;;  %2780 = vmatpush3.bf16.msra.mxu1 %v2937_v4  ;;  %v841_v42 = vld [vmem:[#allocation2 + $0x18] sm:$0xff] }
 0x1b0   : > { %2773 = vmatprep.subr.bf16.mxu1 %v2937_v4 }
 0x1b3   : > { %2781 = vmatpush3.bf16.msra.mxu1 %v2937_v4 }
 0x1b6   : > { %1248 = vmatmul.mubr.bf16.gmra.mxu1 %v3103_v43 }
 0x1b7   : > { %1255 = vmatprep.mubr.bf16.mxu1 %v3106_v44 }
 0x1be   : > { %1256 = vmatmul.mubr.bf16.gmra.mxu1 %v3111_v45  ;;  %v839_v45 = vld [vmem:[#allocation2] sm:$0xff] }
 0x1bf   : > { %1263 = vmatprep.mubr.bf16.mxu1 %v3114_v46 }
 0x1c6   : > { %1264 = vmatmul.mubr.bf16.gmra.mxu1 %v3700_v13 }
 0x1c7   : > { %1271 = vmatprep.mubr.bf16.mxu1 %v3701_v23 }
 0x1ce   : > { %1272 = vmatmul.mubr.bf16.gmra.mxu1 %v3702_v25 }
 0x1cf   : > { %2694 = vmatprep.mubr.bf16.mxu1 %v3232_v55 }
 0x1d6   : > { %2695 = vmatmul.mubr.bf16.vlgmr.msra.gmra.mxu1 %v3241_v22 }
 0x1d7   : > { %2698 = vmatprep.mubr.bf16.mxu1 %v3253_v18 }
 0x1de   : > { %2699 = vmatmul.mubr.bf16.gmra.mxu1 %v3266_v5 }
 0x236   : > { %v2624_v31 = vpop.f32.mrf.mxu1 }
 0x237   : > { %v1025_v37 = vadd.f32 %v2624_v31, %v840_v29 }
 0x238   : > { %v960_v41 = vpop.f32.mrf.mxu1 }
 0x239   : > { %1041 = vst [vmem:[#allocation2 + $0x58] sm:$0xff] %v1025_v37  ;;  %v1023_v43 = vadd.f32 %v960_v41, %v838_v35 }
 0x23a   : > { %v2625_v44 = vpop.f32.mrf.mxu1 }
 0x23b   : > { %1039 = vst [vmem:[#allocation2 + $0x30] sm:$0xff] %v1023_v43  ;;  %v1026_v46 = vadd.f32 %v2625_v44, %v841_v42 }
 0x23c   : > { %v963_v12 = vpop.f32.mrf.mxu1 }
 0x23d   : > { %1042 = vst [vmem:[#allocation2 + $0x18] sm:$0xff] %v1026_v46  ;;  %v1024_v60 = vadd.f32 %v963_v12, %v839_v45 }
 0x23e   : > { %v2628_v26 = vpop.f32.mrf.mxu1 }
 0x23f   : > { %1040 = vst [vmem:[#allocation2] sm:$0xff] %v1024_v60  ;;  %v1029_v9 = vadd.f32 %v2628_v26, %v844_v14 }
 0x240   : > { %v976_v49 = vpop.f32.mrf.mxu1 }
 0x241   : > { %1045 = vst [vmem:[#allocation2 + $0x8] sm:$0xff] %v1029_v9  ;;  %v1027_v48 = vadd.f32 %v976_v49, %v842_v27 }
 0x242   : > { %v2629_v61 = vpop.f32.mrf.mxu1 }
 0x243   : > { %1043 = vst [vmem:[#allocation2 + $0x50] sm:$0xff] %v1027_v48  ;;  %v1030_v0 = vadd.f32 %v2629_v61, %v845_v47 }
 0x244   : > { %v979_v53 = vpop.f32.mrf.mxu1 }
 0x245   : > { %1046 = vst [vmem:[#allocation2 + $0x48] sm:$0xff] %v1030_v0  ;;  %v1028_v56 = vadd.f32 %v979_v53, %v843_v6 }
 0x246   : > { %v2632_v2 = vpop.f32.mrf.mxu1 }
 0x247   : > { %1044 = vst [vmem:[#allocation2 + $0x68] sm:$0xff] %v1028_v56  ;;  %v1033_v28 = vadd.f32 %v2632_v2, %v848_v7 }
 0x248   : > { %v992_v39 = vpop.f32.mrf.mxu1 }
 0x249   : > { %1049 = vst [vmem:[#allocation2 + $0x10] sm:$0xff] %v1033_v28  ;;  %v1031_v51 = vadd.f32 %v992_v39, %v846_v11 }
 0x24a   : > { %v2633_v30 = vpop.f32.mrf.mxu1 }
 0x24b   : > { %1047 = vst [vmem:[#allocation2 + $0x40] sm:$0xff] %v1031_v51  ;;  %v1034_v8 = vadd.f32 %v2633_v30, %v849_v62  ;;  %v1443_v51 = vld [vmem:[#allocation4 + $0x70] sm:$0xff] }
 0x24c   : > { %v995_v33 = vpop.f32.mrf.mxu1 }
 0x24d   : > { %1050 = vst [vmem:[#allocation2 + $0x38] sm:$0xff] %v1034_v8  ;;  %v1032_v36 = vadd.f32 %v995_v33, %v847_v32 }
 0x24e   : > { %v2636_v16 = vpop.f32.mrf.mxu1 }
 0x24f   : > { %1048 = vst [vmem:[#allocation2 + $0x20] sm:$0xff] %v1032_v36  ;;  %v1037_v54 = vadd.f32 %v2636_v16, %v852_v34  ;;  %v1441_v34 = vld [vmem:[#allocation4 + $0x40] sm:$0xff] }
 0x250   : > { %v1008_v57 = vpop.f32.mrf.mxu1 }
 0x251   : > { %1053 = vst [vmem:[#allocation2 + $0x78] sm:$0xff] %v1037_v54  ;;  %v1035_v24 = vadd.f32 %v1008_v57, %v850_v52  ;;  %v1444_v57 = vld [vmem:[#allocation4 + $0x20] sm:$0xff] }
 0x252   : > { %v2637_v21 = vpop.f32.mrf.mxu1 }
 0x253   : > { %1051 = vst [vmem:[#allocation2 + $0x60] sm:$0xff] %v1035_v24  ;;  %v1038_v3 = vadd.f32 %v2637_v21, %v853_v38 }
 0x254   : > { %v1011_v58 = vpop.f32.mrf.mxu1 }
 0x255   : > { %1054 = vst [vmem:[#allocation2 + $0x28] sm:$0xff] %v1038_v3  ;;  %v1036_v1 = vadd.f32 %v1011_v58, %v851_v19  ;;  %v1442_v3 = vld [vmem:[#allocation4 + $0x28] sm:$0xff] }
 0x256   : > { %v2494_v15 = vpop.f32.mrf.mxu1 }
 0x257   : > { %1052 = vst [vmem:[#allocation2 + $0x70] sm:$0xff] %v1036_v1 }
 0x258   : > { %v2495_v17 = vpop.f32.mrf.mxu1 }
 0x259   : > { %v2496_v10 = vadd.f32 %v2495_v17, %v2494_v15  ;;  %v1447_v17 = vld [vmem:[#allocation4 + $0x50] sm:$0xff] }
 0x25a   : > { %v2497_v20 = vpop.f32.mrf.mxu1 }
 0x25c   : > { %v2498_v59 = vpop.f32.mrf.mxu1 }
 0x25d   : > { %v2499_v13 = vadd.f32 %v2498_v59, %v2497_v20 }
 0x25e   : > { %v2500_v23 = vpop.f32.mrf.mxu1 }
 0x25f   : > { %v3314_v25 = vpack.c.bf16 %v2499_v13, %v2496_v10 }
 0x260   : > { %v2501_v29 = vpop.f32.mrf.mxu1 }
 0x261   : > { %v2502_v31 = vadd.f32 %v2501_v29, %v2500_v23  ;;  %v1445_v23 = vld [vmem:[#allocation4 + $0x58] sm:$0xff] }
 0x262   : > { %v2503_v35 = vpop.f32.mrf.mxu1 }
 0x264   : > { %v2504_v37 = vpop.f32.mrf.mxu1 }
 0x265   : > { %v2505_v41 = vadd.f32 %v2504_v37, %v2503_v35  ;;  %v1448_v37 = vld [vmem:[#allocation4 + $0x78] sm:$0xff] }
 0x266   : > { %v3316_v42 = vpop.f32.mrf.mxu1 }
 0x267   : > { %v3318_v43 = vpack.c.bf16 %v2505_v41, %v2502_v31 }
 0x268   : > { %v3320_v44 = vpop.f32.mrf.mxu1 }
 0x26a   : > { %v3322_v45 = vpop.f32.mrf.mxu1 }
 0x26c   : > { %v3324_v46 = vpop.f32.mrf.mxu1 }
 0x26e   : > { %v3326_v12 = vpop.f32.mrf.mxu1 }
 0x270   : > { %v3328_v14 = vpop.f32.mrf.mxu1 }
 0x272   : > { %v2515_v60 = vpop.f32.mrf.mxu1 }
 0x274   : > { %v2516_v26 = vpop.f32.mrf.mxu1 }
 0x275   : > { %v2517_v41 = vadd.f32 %v2516_v26, %v2515_v60  ;;  %v2508_v60 = vadd.f32 %v3320_v44, %v3316_v42 }
 0x276   : > { %v2518_v27 = vpop.f32.mrf.mxu1 }
 0x278   : > { %v2519_v9 = vpop.f32.mrf.mxu1 }
 0x279   : > { %v2520_v29 = vadd.f32 %v2519_v9, %v2518_v27  ;;  %v2511_v27 = vadd.f32 %v3324_v46, %v3322_v45  ;;  %v1281_v46 = vld [vmem:[#allocation3 + $0x68] sm:$0xff] }
 0x27a   : > { %v2521_v49 = vpop.f32.mrf.mxu1 }
 0x27b   : > { %v1298_v26 = vpack.c.bf16 %v2511_v27, %v2508_v60 }
 0x27c   : > { %v2522_v47 = vpop.f32.mrf.mxu1 }
 0x27d   : > { %v2523_v10 = vadd.f32 %v2522_v47, %v2521_v49  ;;  %v2514_v49 = vadd.f32 %v3328_v14, %v3326_v12 }
 0x27e   : > { %v2524_v48 = vpop.f32.mrf.mxu1 }
 0x27f   : > { %v1299_v9 = vpack.c.bf16 %v2517_v41, %v2514_v49  ;;  %v1433_v41 = vld [vmem:[#allocation4 + $0x8] sm:$0xff] }
 0x280   : > { %v2525_v61 = vpop.f32.mrf.mxu1 }
 0x281   : > { %v2526_v58 = vadd.f32 %v2525_v61, %v2524_v48  ;;  %v1300_v48 = vpack.c.bf16 %v2523_v10, %v2520_v29  ;;  %v1295_v10 = vld [vmem:[#allocation3 + $0x50] sm:$0xff] }
 0x282   : > { %v2527_v6 = vpop.f32.mrf.mxu1 }
 0x284   : > { %v2528_v0 = vpop.f32.mrf.mxu1 }
 0x285   : > { %v2529_v38 = vadd.f32 %v2528_v0, %v2527_v6  ;;  %v1446_v0 = vld [vmem:[#allocation4 + $0x30] sm:$0xff] }
 0x286   : > { %v2530_v53 = vpop.f32.mrf.mxu1 }
 0x287   : > { %v1301_v20 = vpack.c.bf16 %v2529_v38, %v2526_v58  ;;  %v1289_v38 = vld [vmem:[#allocation3 + $0x78] sm:$0xff] }
 0x288   : > { %v2531_v7 = vpop.f32.mrf.mxu1 }
 0x289   : > { %v2532_v36 = vadd.f32 %v2531_v7, %v2530_v53 }
 0x28a   : > { %v2533_v56 = vpop.f32.mrf.mxu1 }
 0x28c   : > { %v2534_v2 = vpop.f32.mrf.mxu1 }
 0x28d   : > { %v2535_v30 = vadd.f32 %v2534_v2, %v2533_v56 }
 0x28e   : > { %v2536_v11 = vpop.f32.mrf.mxu1 }
 0x28f   : > { %v1302_v24 = vpack.c.bf16 %v2535_v30, %v2532_v36 }
 0x290   : > { %v2537_v28 = vpop.f32.mrf.mxu1 }
 0x291   : > { %v2538_v32 = vadd.f32 %v2537_v28, %v2536_v11  ;;  %v1287_v11 = vld [vmem:[#allocation3 + $0x38] sm:$0xff] }
 0x292   : > { %v2539_v39 = vpop.f32.mrf.mxu1 }
 0x294   : > { %v2540_v62 = vpop.f32.mrf.mxu1 }
 0x295   : > { %v2541_v8 = vadd.f32 %v2540_v62, %v2539_v39  ;;  %v1285_v62 = vld [vmem:[#allocation3 + $0x30] sm:$0xff] }
 0x296   : > { %v2696_v33 = vpop.f32.mrf.mxu1 }
 0x297   : > { %v1303_v16 = vpack.c.bf16 %v2541_v8, %v2538_v32  ;;  %v1556_v52 = vadd.f32 %v2696_v33, %v1443_v51  ;;  %v1290_v32 = vld [vmem:[#allocation3 + $0x18] sm:$0xff] }
 0x298   : > { %v1515_v54 = vpop.f32.mrf.mxu1 }
 0x299   : > { %1572 = vst [vmem:[#allocation4 + $0x70] sm:$0xff] %v1556_v52  ;;  %v1554_v21 = vadd.f32 %v1515_v54, %v1441_v34  ;;  %2638 = vmatprep.subr.bf16.mxu0 %v1303_v16  ;;  %v1288_v34 = vld [vmem:[#allocation3 + $0x20] sm:$0xff]  ;;  %v1291_v52 = vld [vmem:[#allocation3 + $0x58] sm:$0xff] }
 0x29a   : > { %2639 = vmatpush3.bf16.msra.mxu0 %v1303_v16  ;;  %v2697_v19 = vpop.f32.mrf.mxu1 }
 0x29b   : > { %1570 = vst [vmem:[#allocation4 + $0x40] sm:$0xff] %v1554_v21  ;;  %v1557_v1 = vadd.f32 %v2697_v19, %v1444_v57  ;;  %2640 = vmatprep.subr.bf16.mxu0 %v1302_v24  ;;  %v1294_v19 = vld [vmem:[#allocation3 + $0x60] sm:$0xff] }
 0x29c   : > { %v1518_v15 = vpop.f32.mrf.mxu1 }
 0x29d   : > { %1573 = vst [vmem:[#allocation4 + $0x20] sm:$0xff] %v1557_v1  ;;  %v1555_v59 = vadd.f32 %v1518_v15, %v1442_v3  ;;  %v1292_v1 = vld [vmem:[#allocation3] sm:$0xff] }
 0x29e   : > { %2641 = vmatpush3.bf16.msra.mxu0 %v1302_v24  ;;  %v2700_v13 = vpop.f32.mrf.mxu1 }
 0x29f   : > { %1571 = vst [vmem:[#allocation4 + $0x28] sm:$0xff] %v1555_v59  ;;  %v1560_v31 = vadd.f32 %v2700_v13, %v1447_v17  ;;  %2642 = vmatprep.subr.bf16.mxu0 %v1301_v20  ;;  %v1293_v13 = vld [vmem:[#allocation3 + $0x8] sm:$0xff] }
 0x2a0   : > { %v1531_v35 = vpop.f32.mrf.mxu1 }
 0x2a1   : > { %1576 = vst [vmem:[#allocation4 + $0x50] sm:$0xff] %v1560_v31  ;;  %v1558_v61 = vadd.f32 %v1531_v35, %v1445_v23  ;;  %v1435_v31 = vld [vmem:[#allocation4 + $0x48] sm:$0xff] }
 0x2a2   : > { %2643 = vmatpush3.bf16.msra.mxu0 %v1301_v20  ;;  %v2701_v6 = vpop.f32.mrf.mxu1 }
 0x2a3   : > { %1574 = vst [vmem:[#allocation4 + $0x58] sm:$0xff] %v1558_v61  ;;  %v1561_v47 = vadd.f32 %v2701_v6, %v1448_v37  ;;  %2644 = vmatprep.subr.bf16.mxu0 %v1300_v48  ;;  %v1436_v6 = vld [vmem:[#allocation4 + $0x60] sm:$0xff] }
 0x2a4   : > { %v1534_v53 = vpop.f32.mrf.mxu1 }
 0x2a5   : > { %1577 = vst [vmem:[#allocation4 + $0x78] sm:$0xff] %v1561_v47  ;;  %v1559_v7 = vadd.f32 %v1534_v53, %v1446_v0  ;;  %v1434_v47 = vld [vmem:[#allocation4] sm:$0xff] }
 0x2a6   : > { %2645 = vmatpush3.bf16.msra.mxu0 %v1300_v48 }
 0x2a7   : > { %1575 = vst [vmem:[#allocation4 + $0x30] sm:$0xff] %v1559_v7  ;;  %2646 = vmatprep.subr.bf16.mxu0 %v1299_v9 }
 0x2aa   : > { %2647 = vmatpush3.bf16.msra.mxu0 %v1299_v9  ;;  %v1439_v9 = vld [vmem:[#allocation4 + $0x10] sm:$0xff] }
 0x2ab   : > { %2648 = vmatprep.subr.bf16.mxu0 %v1298_v26 }
 0x2ae   : > { %2649 = vmatpush3.bf16.msra.mxu0 %v1298_v26  ;;  %v1437_v26 = vld [vmem:[#allocation4 + $0x68] sm:$0xff] }
 0x2af   : > { %2650 = vmatprep.subr.bf16.mxu0 %v3318_v43 }
 0x2b2   : > { %2651 = vmatpush3.bf16.msra.mxu0 %v3318_v43 }
 0x2b3   : > { %2652 = vmatprep.subr.bf16.mxu0 %v3314_v25 }
 0x2b6   : > { %2653 = vmatpush3.bf16.msra.mxu0 %v3314_v25  ;;  %v1280_v25 = vld [vmem:[#allocation3 + $0x28] sm:$0xff] }
 0x2b7   : > { %2670 = vmatprep.subr.bf16.mxu0 %v2937_v4 }
 0x2b9   : > { %2655 = vmatmul.mubr.bf16.vlgmr.msra.gmra.mxu0 %v3205_v63 }
 0x2ba   : > { %2658 = vmatprep.mubr.bf16.mxu0 %v3208_v40  ;;  %2671 = vmatpush3.bf16.msra.mxu0 %v2937_v4 }
 0x2bb   : > { %2672 = vmatprep.subr.bf16.mxu0 %v2937_v4 }
 0x2be   : > { %2673 = vmatpush3.bf16.msra.mxu0 %v2937_v4 }
 0x2bf   : > { %2674 = vmatprep.subr.bf16.mxu0 %v2937_v4 }
 0x2c1   : > { %2659 = vmatmul.mubr.bf16.gmra.mxu0 %v3215_v50 }
 0x2c2   : > { %2662 = vmatprep.mubr.bf16.mxu0 %v3232_v55  ;;  %2675 = vmatpush3.bf16.msra.mxu0 %v2937_v4  ;;  %v3703_v55 = vld [vmem:[#allocation8_spill] sm:$0xff] }
 0x2c3   : > { %2676 = vmatprep.subr.bf16.mxu0 %v2937_v4 }
 0x2c6   : > { %2677 = vmatpush3.bf16.msra.mxu0 %v2937_v4 }
 0x2c7   : > { %2678 = vmatprep.subr.bf16.mxu0 %v2937_v4 }
 0x2c9   : > { %2663 = vmatmul.mubr.bf16.gmra.mxu0 %v3241_v22  ;;  %v1282_v22 = vld [vmem:[#allocation3 + $0x10] sm:$0xff] }
 0x2ca   : > { %2666 = vmatprep.mubr.bf16.mxu0 %v3253_v18  ;;  %2679 = vmatpush3.bf16.msra.mxu0 %v2937_v4 }
 0x2cb   : > { %2680 = vmatprep.subr.bf16.mxu0 %v2937_v4 }
 0x2ce   : > { %2681 = vmatpush3.bf16.msra.mxu0 %v2937_v4 }
 0x2cf   : > { %2682 = vmatprep.subr.bf16.mxu0 %v2937_v4 }
 0x2d1   : > { %2667 = vmatmul.mubr.bf16.gmra.mxu0 %v3266_v5  ;;  %v1283_v5 = vld [vmem:[#allocation3 + $0x40] sm:$0xff] }
 0x2d2   : > { %2683 = vmatpush3.bf16.msra.mxu0 %v2937_v4  ;;  %2686 = vmatprep.mubr.bf16.mxu0 %v3703_v55 }
 0x2d3   : > { %2684 = vmatprep.subr.bf16.mxu0 %v2937_v4 }
 0x2d6   : > { %2685 = vmatpush3.bf16.msra.mxu0 %v2937_v4  ;;  %v1286_v4 = vld [vmem:[#allocation3 + $0x70] sm:$0xff] }
 0x2d9   : > { %2687 = vmatmul.mubr.bf16.vlgmr.msra.gmra.mxu0 %v3205_v63 }
 0x2da   : > { %2690 = vmatprep.mubr.bf16.mxu0 %v3208_v40  ;;  %v1284_v40 = vld [vmem:[#allocation3 + $0x48] sm:$0xff] }
 0x2e1   : > { %2691 = vmatmul.mubr.bf16.gmra.mxu0 %v3215_v50 }
 0x379   : > { %v2656_v18 = vpop.f32.mrf.mxu0 }
 0x37a   : > { %v1403_v42 = vadd.f32 %v2656_v18, %v1282_v22  ;;  %v1440_v18 = vld [vmem:[#allocation4 + $0x38] sm:$0xff] }
 0x37b   : > { %v1338_v43 = vpop.f32.mrf.mxu0 }
 0x37c   : > { %1419 = vst [vmem:[#allocation3 + $0x10] sm:$0xff] %v1403_v42  ;;  %v1401_v44 = vadd.f32 %v1338_v43, %v1280_v25  ;;  %v1438_v43 = vld [vmem:[#allocation4 + $0x18] sm:$0xff] }
 0x37d   : > { %v2657_v45 = vpop.f32.mrf.mxu0 }
 0x37e   : > { %1417 = vst [vmem:[#allocation3 + $0x28] sm:$0xff] %v1401_v44  ;;  %v1404_v12 = vadd.f32 %v2657_v45, %v1283_v5 }
 0x37f   : > { %v1341_v14 = vpop.f32.mrf.mxu0 }
 0x380   : > { %1420 = vst [vmem:[#allocation3 + $0x40] sm:$0xff] %v1404_v12  ;;  %v1402_v63 = vadd.f32 %v1341_v14, %v1281_v46 }
 0x381   : > { %v2660_v56 = vpop.f32.mrf.mxu0 }
 0x382   : > { %1418 = vst [vmem:[#allocation3 + $0x68] sm:$0xff] %v1402_v63  ;;  %v1407_v50 = vadd.f32 %v2660_v56, %v1286_v4 }
 0x383   : > { %v1354_v2 = vpop.f32.mrf.mxu0 }
 0x384   : > { %1423 = vst [vmem:[#allocation3 + $0x70] sm:$0xff] %v1407_v50  ;;  %v1405_v28 = vadd.f32 %v1354_v2, %v1284_v40 }
 0x385   : > { %v2661_v39 = vpop.f32.mrf.mxu0 }
 0x386   : > { %1421 = vst [vmem:[#allocation3 + $0x48] sm:$0xff] %v1405_v28  ;;  %v1408_v51 = vadd.f32 %v2661_v39, %v1287_v11 }
 0x387   : > { %v1357_v30 = vpop.f32.mrf.mxu0 }
 0x388   : > { %1424 = vst [vmem:[#allocation3 + $0x38] sm:$0xff] %v1408_v51  ;;  %v1406_v8 = vadd.f32 %v1357_v30, %v1285_v62 }
 0x389   : > { %v2664_v33 = vpop.f32.mrf.mxu0 }
 0x38a   : > { %1422 = vst [vmem:[#allocation3 + $0x30] sm:$0xff] %v1406_v8  ;;  %v1411_v36 = vadd.f32 %v2664_v33, %v1290_v32 }
 0x38b   : > { %v1370_v16 = vpop.f32.mrf.mxu0 }
 0x38c   : > { %1427 = vst [vmem:[#allocation3 + $0x18] sm:$0xff] %v1411_v36  ;;  %v1409_v54 = vadd.f32 %v1370_v16, %v1288_v34 }
 0x38d   : > { %v2665_v57 = vpop.f32.mrf.mxu0 }
 0x38e   : > { %1425 = vst [vmem:[#allocation3 + $0x20] sm:$0xff] %v1409_v54  ;;  %v1412_v24 = vadd.f32 %v2665_v57, %v1291_v52 }
 0x38f   : > { %v1373_v21 = vpop.f32.mrf.mxu0 }
 0x390   : > { %1428 = vst [vmem:[#allocation3 + $0x58] sm:$0xff] %v1412_v24  ;;  %v1410_v3 = vadd.f32 %v1373_v21, %v1289_v38 }
 0x391   : > { %v2668_v58 = vpop.f32.mrf.mxu0 }
 0x392   : > { %1426 = vst [vmem:[#allocation3 + $0x78] sm:$0xff] %v1410_v3  ;;  %v1415_v15 = vadd.f32 %v2668_v58, %v1294_v19 }
 0x393   : > { %v1386_v17 = vpop.f32.mrf.mxu0 }
 0x394   : > { %1431 = vst [vmem:[#allocation3 + $0x60] sm:$0xff] %v1415_v15  ;;  %v1413_v20 = vadd.f32 %v1386_v17, %v1292_v1 }
 0x395   : > { %v2669_v59 = vpop.f32.mrf.mxu0 }
 0x396   : > { %1429 = vst [vmem:[#allocation3] sm:$0xff] %v1413_v20  ;;  %v1416_v23 = vadd.f32 %v2669_v59, %v1295_v10 }
 0x397   : > { %v1389_v29 = vpop.f32.mrf.mxu0 }
 0x398   : > { %1432 = vst [vmem:[#allocation3 + $0x50] sm:$0xff] %v1416_v23  ;;  %v1414_v35 = vadd.f32 %v1389_v29, %v1293_v13 }
 0x399   : > { %v2688_v37 = vpop.f32.mrf.mxu0 }
 0x39a   : > { %1430 = vst [vmem:[#allocation3 + $0x8] sm:$0xff] %v1414_v35  ;;  %v1548_v48 = vadd.f32 %v2688_v37, %v1435_v31 }
 0x39b   : > { %v1483_v61 = vpop.f32.mrf.mxu0 }
 0x39c   : > { %1564 = vst [vmem:[#allocation4 + $0x48] sm:$0xff] %v1548_v48  ;;  %v1546_v0 = vadd.f32 %v1483_v61, %v1433_v41 }
 0x39d   : > { %v2689_v49 = vpop.f32.mrf.mxu0 }
 0x39e   : > { %1562 = vst [vmem:[#allocation4 + $0x8] sm:$0xff] %v1546_v0  ;;  %v1549_v53 = vadd.f32 %v2689_v49, %v1436_v6 }
 0x39f   : > { %v1486_v27 = vpop.f32.mrf.mxu0 }
 0x3a0   : > { %1565 = vst [vmem:[#allocation4 + $0x60] sm:$0xff] %v1549_v53  ;;  %v1547_v7 = vadd.f32 %v1486_v27, %v1434_v47 }
 0x3a1   : > { %v2692_v60 = vpop.f32.mrf.mxu0 }
 0x3a2   : > { %1563 = vst [vmem:[#allocation4] sm:$0xff] %v1547_v7  ;;  %v1552_v55 = vadd.f32 %v2692_v60, %v1439_v9 }
 0x3a3   : > { %v1499_v22 = vpop.f32.mrf.mxu0 }
 0x3a4   : > { %1568 = vst [vmem:[#allocation4 + $0x10] sm:$0xff] %v1552_v55  ;;  %v1550_v25 = vadd.f32 %v1499_v22, %v1437_v26 }
 0x3a5   : > { %v2693_v42 = vpop.f32.mrf.mxu0 }
 0x3a6   : > { %1566 = vst [vmem:[#allocation4 + $0x68] sm:$0xff] %v1550_v25  ;;  %v1553_v5 = vadd.f32 %v2693_v42, %v1440_v18  ;;  %1581 = sbr.rel (%p2377_p5) target bundleno = 1575 (0x627), region = 56 }
 0x3a7   : > { %v1502_v44 = vpop.f32.mrf.mxu0 }
 0x3a8   : > { %1569 = vst [vmem:[#allocation4 + $0x38] sm:$0xff] %v1553_v5  ;;  %v1551_v45 = vadd.f32 %v1502_v44, %v1438_v43 }
 0x3aa   : > { %1567 = vst [vmem:[#allocation4 + $0x18] sm:$0xff] %v1551_v45 }
 0x3ab   : > { %v1584_v46 = vld [vmem:[#allocation4 + $0x48] sm:$0xff]  ;;  %v1585_v14 = vld [vmem:[#allocation4 + $0x60] sm:$0xff]  ;;  %v2938_v4 = vmov 0   ;;  %v1975_v62 = vld [vmem:[%s3689_s5 + $0x70] sm:$0xff]  ;;  %v1758_v18 = vlaneseq }
 0x3ac   : > { %v1582_v12 = vld [vmem:[#allocation4 + $0x8] sm:$0xff]  ;;  %2862 = vset.pattern.permute.xlu1 %v2938_v4  ;;  %2861 = vset.pattern.permute.xlu0 %v2938_v4  ;;  %v1600_v63 = vmax.f32 %v1584_v46, 1.0  ;;  %v1601_v40 = vmax.f32 %v1585_v14, 1.0  ;;  %v1583_v50 = vld [vmem:[#allocation4] sm:$0xff]  ;;  %v1976_v51 = vld [vmem:[%s3689_s5 + $0x78] sm:$0xff] }
 0x3ad   : > { %v1598_v56 = vmax.f32 %v1582_v12, 1.0  ;;  %v1599_v2 = vmax.f32 %v1583_v50, 1.0  ;;  %v1586_v28 = vld [vmem:[#allocation4 + $0x68] sm:$0xff]  ;;  %v1984_v8 = vpack.c.bf16 %v1976_v51, %v1975_v62  ;;  %v1973_v33 = vld [vmem:[%s3689_s5 + $0x60] sm:$0xff]  ;;  %v1588_v36 = vld [vmem:[#allocation4 + $0x10] sm:$0xff]  ;;  %v3410_v44 = vshrl.u32 %v1758_v18, 7 }
 0x3ae   : > { %2863 = vrcp.f32 %v1600_v63  ;;  %v1602_v30 = vmax.f32 %v1586_v28, 1.0  ;;  %v1974_v34 = vld [vmem:[%s3689_s5 + $0x68] sm:$0xff]  ;;  %v1971_v52 = vld [vmem:[%s3689_s5 + $0x50] sm:$0xff]  ;;  %v1972_v54 = vld [vmem:[%s3689_s5 + $0x58] sm:$0xff]  ;;  %v1604_v38 = vmax.f32 %v1588_v36, 1.0  ;;  %v3419_v4 = vand.u32 127, %v1758_v18 }
 0x3af   : > { %2865 = vrcp.f32 %v1598_v56  ;;  %v1589_v32 = vld [vmem:[#allocation4 + $0x38] sm:$0xff]  ;;  %v1983_v16 = vpack.c.bf16 %v1974_v34, %v1973_v33  ;;  %2702 = vmatprep.subr.bf16.mxu0 %v1984_v8  ;;  %v1591_v24 = vld [vmem:[#allocation4 + $0x28] sm:$0xff]  ;;  %v1982_v21 = vpack.c.bf16 %v1972_v54, %v1971_v52  ;;  %v1590_v19 = vld [vmem:[#allocation4 + $0x40] sm:$0xff]  ;;  %v1773_v14 = vadd.s32 112, %v3410_v44 }
 0x3b0   : > { %2867 = vrcp.f32 %v1601_v40  ;;  %v1605_v57 = vmax.f32 %v1589_v32, 1.0  ;;  %2703 = vmatpush3.bf16.msra.mxu0 %v1984_v8  ;;  %v1969_v3 = vld [vmem:[%s3689_s5 + $0x40] sm:$0xff]  ;;  %v1970_v58 = vld [vmem:[%s3689_s5 + $0x48] sm:$0xff]  ;;  %v1607_v1 = vmax.f32 %v1591_v24, 1.0  ;;  %v1606_v15 = vmax.f32 %v1590_v19, 1.0  ;;  %v1592_v20 = vld [vmem:[#allocation4 + $0x70] sm:$0xff] }
 0x3b1   : > { %v1587_v11 = vld [vmem:[#allocation4 + $0x18] sm:$0xff]  ;;  %2869 = vrcp.f32 %v1599_v2  ;;  %2704 = vmatprep.subr.bf16.mxu0 %v1983_v16  ;;  %v1593_v17 = vld [vmem:[#allocation4 + $0x20] sm:$0xff]  ;;  %v1981_v10 = vpack.c.bf16 %v1970_v58, %v1969_v3  ;;  %v1967_v59 = vld [vmem:[%s3689_s5 + $0x30] sm:$0xff]  ;;  %v1608_v37 = vmax.f32 %v1592_v20, 1.0  ;;  %vm1791_vm0 = vcmp.eq.s32.totalorder %v1773_v14, %v3419_v4 }
 0x3b2   : > { %v1603_v39 = vmax.f32 %v1587_v11, 1.0  ;;  %v1968_v13 = vld [vmem:[%s3689_s5 + $0x38] sm:$0xff]  ;;  %v1609_v31 = vmax.f32 %v1593_v17, 1.0  ;;  %v1595_v41 = vld [vmem:[#allocation4 + $0x30] sm:$0xff]  ;;  %v1965_v0 = vld [vmem:[%s3689_s5 + $0x20] sm:$0xff]  ;;  %v2939_v2 = vmov 0.0  }
 0x3b3   : > { %v1980_v48 = vpack.c.bf16 %v1968_v13, %v1967_v59  ;;  %v1594_v6 = vld [vmem:[#allocation4 + $0x58] sm:$0xff]  ;;  %v1966_v49 = vld [vmem:[%s3689_s5 + $0x28] sm:$0xff]  ;;  %v1611_v47 = vmax.f32 %v1595_v41, 1.0  ;;  %v1596_v26 = vld [vmem:[#allocation4 + $0x50] sm:$0xff]  ;;  %v2392_v11 = vsel %vm1791_vm0, 1.0, %v2939_v2  ;;  %v1771_v62 = vadd.s32 96, %v3410_v44 }
 0x3b4   : > { %2871 = vrcp.f32 %v1603_v39  ;;  %2705 = vmatpush3.bf16.msra.mxu0 %v1983_v16  ;;  %v1610_v27 = vmax.f32 %v1594_v6, 1.0  ;;  %v1597_v9 = vld [vmem:[#allocation4 + $0x78] sm:$0xff]  ;;  %v1979_v7 = vpack.c.bf16 %v1966_v49, %v1965_v0  ;;  %v1963_v55 = vld [vmem:[%s3689_s5 + $0x10] sm:$0xff]  ;;  %v1612_v43 = vmax.f32 %v1596_v26, 1.0  ;;  %v1961_v46 = vld [vmem:[%s3689_s5] sm:$0xff] }
 0x3b5   : > { %2873 = vrcp.f32 %v1602_v30  ;;  %2706 = vmatprep.subr.bf16.mxu0 %v1982_v21  ;;  %v1964_v22 = vld [vmem:[%s3689_s5 + $0x18] sm:$0xff]  ;;  %v1613_v25 = vmax.f32 %v1597_v9, 1.0  ;;  %v1962_v12 = vld [vmem:[%s3689_s5 + $0x8] sm:$0xff]  ;;  %v1756_v50 = vld [vmem:[#allocation3 + $0x60] sm:$0xff]  ;;  %v1871_v28 = vsub.f32 1.0, %v2392_v11  ;;  %v1774_v39 = vadd.s32 120, %v3410_v44 }
 0x3b6   : > { %2875 = vrcp.f32 %v1605_v57  ;;  %v1978_v5 = vpack.c.bf16 %v1964_v22, %v1963_v55  ;;  %v1977_v56 = vpack.c.bf16 %v1962_v12, %v1961_v46  ;;  %vm1839_vm1 = vcmp.gt.f32.partialorder %v1756_v50, 0.0  ;;  %v1757_v33 = vld [vmem:[#allocation3 + $0x50] sm:$0xff]  ;;  %v1754_v36 = vld [vmem:[#allocation3] sm:$0xff]  ;;  %v1755_v17 = vld [vmem:[#allocation3 + $0x8] sm:$0xff] }
 0x3b7   : > { %2877 = vrcp.f32 %v1604_v38  ;;  %v1855_v51 = vsel %vm1839_vm1, 1.0, %v2939_v2  ;;  %vm1792_vm2 = vcmp.eq.s32.totalorder %v1774_v39, %v3419_v4  ;;  %vm1789_vm3 = vcmp.eq.s32.totalorder %v1771_v62, %v3419_v4  ;;  %v1750_v0 = vld [vmem:[#allocation3 + $0x20] sm:$0xff]  ;;  %v1753_v49 = vld [vmem:[#allocation3 + $0x58] sm:$0xff]  ;;  %v1746_v62 = vld [vmem:[#allocation3 + $0x48] sm:$0xff] }
 0x3b8   : > { %2879 = vrcp.f32 %v1607_v1  ;;  %2707 = vmatpush3.bf16.msra.mxu0 %v1982_v21  ;;  %v1887_v8 = vmul.f32 %v1871_v28, %v1855_v51  ;;  %v2393_v34 = vsel %vm1792_vm2, 1.0, %v2939_v2  ;;  %v2390_v16 = vsel %vm1789_vm3, 1.0, %v2939_v2  ;;  %v1749_v14 = vld [vmem:[#allocation3 + $0x38] sm:$0xff] }
 0x3b9   : > { %2881 = vrcp.f32 %v1606_v15  ;;  %2708 = vmatprep.subr.bf16.mxu0 %v1981_v10  ;;  %vm1840_vm4 = vcmp.gt.f32.partialorder %v1757_v33, 0.0  ;;  %v1872_v52 = vsub.f32 1.0, %v2393_v34  ;;  %vm1837_vm5 = vcmp.gt.f32.partialorder %v1754_v36, 0.0  ;;  %v1752_v15 = vld [vmem:[#allocation3 + $0x18] sm:$0xff] }
 0x3ba   : > { %2883 = vrcp.f32 %v1609_v31  ;;  %v1856_v54 = vsel %vm1840_vm4, 1.0, %v2939_v2  ;;  %v1853_v57 = vsel %vm1837_vm5, 1.0, %v2939_v2  ;;  %v1869_v38 = vsub.f32 1.0, %v2390_v16 }
 0x3bb   : > { %v2864_v23 = vpop.eup %2863  ;;  %2885 = vrcp.f32 %v1608_v37  ;;  %v1769_v24 = vadd.s32 80, %v3410_v44  ;;  %v1888_v19 = vmul.f32 %v1872_v52, %v1856_v54  ;;  %v1772_v3 = vadd.s32 104, %v3410_v44 }
 0x3bc   : > { %v2866_v29 = vpop.eup %2865  ;;  %1658 = vperm.xlu1 %2862, %v2864_v23   ;;  %2709 = vmatpush3.bf16.msra.mxu0 %v1981_v10  ;;  %2887 = vrcp.f32 %v1611_v47  ;;  %v3434_v1 = vadd.f32 %v2392_v11, %v1887_v8  ;;  %v1885_v10 = vmul.f32 %v1869_v38, %v1853_v57  ;;  %vm1835_vm7 = vcmp.gt.f32.partialorder %v1752_v15, 0.0 }
 0x3bd   : > { %v2868_v35 = vpop.eup %2867  ;;  %1648 = vperm.xlu0 %2861, %v2866_v29   ;;  %2710 = vmatprep.subr.bf16.mxu0 %v1980_v48  ;;  %2889 = vrcp.f32 %v1610_v27  ;;  %vm1787_vm6 = vcmp.eq.s32.totalorder %v1769_v24, %v3419_v4  ;;  %vm1790_vm8 = vcmp.eq.s32.totalorder %v1772_v3, %v3419_v4  ;;  %v3439_v59 = vadd.f32 %v2393_v34, %v1888_v19  ;;  %v1747_v24 = vld [vmem:[#allocation3 + $0x30] sm:$0xff] }
 0x3be   : > { %v2870_v61 = vpop.eup %2869  ;;  %2891 = vrcp.f32 %v1613_v25  ;;  %v2388_v20 = vsel %vm1787_vm6, 1.0, %v2939_v2  ;;  %v1851_v13 = vsel %vm1835_vm7, 1.0, %v2939_v2  ;;  %v2391_v29 = vsel %vm1790_vm8, 1.0, %v2939_v2  ;;  %v1748_v25 = vld [vmem:[#allocation3 + $0x70] sm:$0xff] }
 0x3bf   : > { %2893 = vrcp.f32 %v1612_v43  ;;  %v1867_v23 = vsub.f32 1.0, %v2388_v20  ;;  %vm1838_vm9 = vcmp.gt.f32.partialorder %v1755_v17, 0.0  ;;  %v1767_v37 = vadd.s32 64, %v3410_v44  ;;  %v1751_v43 = vld [vmem:[#allocation3 + $0x78] sm:$0xff]  ;;  %v1744_v3 = vld [vmem:[#allocation3 + $0x10] sm:$0xff] }
 0x3c0   : > { %1663 = vperm.xlu1 %2862, %v2868_v35   ;;  %2711 = vmatpush3.bf16.msra.mxu0 %v1980_v48  ;;  %v1870_v35 = vsub.f32 1.0, %v2391_v29  ;;  %v1770_v41 = vadd.s32 88, %v3410_v44  ;;  %v1854_v6 = vsel %vm1838_vm9, 1.0, %v2939_v2  ;;  %v2089_v47 = vpack.c.bf16 %v3439_v59, %v3434_v1 }
 0x3c1   : > { %v2872_v53 = vpop.eup %2871  ;;  %1653 = vperm.xlu0 %2861, %v2870_v61   ;;  %2712 = vmatprep.subr.bf16.mxu0 %v1979_v7  ;;  %v1883_v61 = vmul.f32 %v1867_v23, %v1851_v13  ;;  %vm1785_vm10 = vcmp.eq.s32.totalorder %v1767_v37, %v3419_v4  ;;  %vm1833_vm11 = vcmp.gt.f32.partialorder %v1750_v0, 0.0  ;;  %v3449_v27 = vadd.f32 %v2390_v16, %v1885_v10  ;;  %v1745_v13 = vld [vmem:[#allocation3 + $0x40] sm:$0xff] }
 0x3c2   : > { %v2874_v60 = vpop.eup %2873  ;;  %v2386_v9 = vsel %vm1785_vm10, 1.0, %v2939_v2  ;;  %vm1788_vm12 = vcmp.eq.s32.totalorder %v1770_v41, %v3419_v4  ;;  %vm1836_vm13 = vcmp.gt.f32.partialorder %v1753_v49, 0.0  ;;  %vm1834_vm14 = vcmp.gt.f32.partialorder %v1751_v43, 0.0 }
 0x3c3   : > { %v2876_v42 = vpop.eup %2875  ;;  %v1865_v26 = vsub.f32 1.0, %v2386_v9  ;;  %v2389_v55 = vsel %vm1788_vm12, 1.0, %v2939_v2  ;;  %v1852_v22 = vsel %vm1836_vm13, 1.0, %v2939_v2  ;;  %vm1831_vm0 = vcmp.gt.f32.partialorder %v1748_v25, 0.0 }
 0x3c4   : > { %1673 = vperm.xlu1 %2862, %v2872_v53   ;;  %v2878_v45 = vpop.eup %2877  ;;  %2713 = vmatpush3.bf16.msra.mxu0 %v1979_v7  ;;  %v1886_v53 = vmul.f32 %v1870_v35, %v1854_v6  ;;  %v1849_v7 = vsel %vm1833_vm11, 1.0, %v2939_v2  ;;  %v1868_v18 = vsub.f32 1.0, %v2389_v55  ;;  %v1850_v50 = vsel %vm1834_vm14, 1.0, %v2939_v2 }
 0x3c5   : > { %1668 = vperm.xlu0 %2861, %v2874_v60   ;;  %v2880_v63 = vpop.eup %2879  ;;  %2714 = vmatprep.subr.bf16.mxu0 %v1978_v5  ;;  %v1763_v51 = vadd.s32 32, %v3410_v44  ;;  %vm1832_vm2 = vcmp.gt.f32.partialorder %v1749_v14, 0.0  ;;  %v1761_v8 = vadd.s32 16, %v3410_v44  ;;  %vm1829_vm4 = vcmp.gt.f32.partialorder %v1746_v62, 0.0  ;;  %v1742_v14 = vld [vmem:[#allocation3 + $0x28] sm:$0xff] }
 0x3c6   : > { %v2882_v40 = vpop.eup %2881  ;;  %v3454_v60 = vadd.f32 %v2391_v29, %v1886_v53  ;;  %v1884_v12 = vmul.f32 %v1868_v18, %v1852_v22  ;;  %v1848_v38 = vsel %vm1832_vm2, 1.0, %v2939_v2  ;;  %v1845_v17 = vsel %vm1829_vm4, 1.0, %v2939_v2 }
 0x3c7   : > { %v2884_v30 = vpop.eup %2883  ;;  %vm1781_vm3 = vcmp.eq.s32.totalorder %v1763_v51, %v3419_v4  ;;  %vm1779_vm6 = vcmp.eq.s32.totalorder %v1761_v8, %v3419_v4  ;;  %vm1830_vm8 = vcmp.gt.f32.partialorder %v1747_v24, 0.0  ;;  %vm1827_vm9 = vcmp.gt.f32.partialorder %v1744_v3, 0.0 }
 0x3c8   : > { %1683 = vperm.xlu1 %2862, %v2876_v42   ;;  %2715 = vmatpush3.bf16.msra.mxu0 %v1978_v5  ;;  %v2886_v32 = vpop.eup %2885  ;;  %v1765_v42 = vadd.s32 48, %v3410_v44  ;;  %v1768_v5 = vadd.s32 72, %v3410_v44  ;;  %v2088_v46 = vpack.c.bf16 %v3454_v60, %v3449_v27  ;;  %v3469_v11 = vadd.f32 %v2389_v55, %v1884_v12 }
 0x3c9   : > { %1678 = vperm.xlu0 %2861, %v2878_v45   ;;  %2716 = vmatprep.subr.bf16.mxu0 %v1977_v56  ;;  %v2888_v21 = vpop.eup %2887  ;;  %v3460_v45 = vadd.f32 %v2388_v20, %v1883_v61  ;;  %v2382_v16 = vsel %vm1781_vm3, 1.0, %v2939_v2  ;;  %v2380_v20 = vsel %vm1779_vm6, 1.0, %v2939_v2  ;;  %v1846_v29 = vsel %vm1830_vm8, 1.0, %v2939_v2 }
 0x3ca   : > { %v2890_v58 = vpop.eup %2889  ;;  %vm1783_vm15 = vcmp.eq.s32.totalorder %v1765_v42, %v3419_v4  ;;  %vm1786_vm1 = vcmp.eq.s32.totalorder %v1768_v5, %v3419_v4  ;;  %v1762_v61 = vadd.s32 24, %v3410_v44  ;;  %vm1828_vm10 = vcmp.gt.f32.partialorder %v1745_v13, 0.0 }
 0x3cb   : > { %v2892_v31 = vpop.eup %2891  ;;  %v2087_v33 = vpack.c.bf16 %v3469_v11, %v3460_v45  ;;  %v1843_v0 = vsel %vm1827_vm9, 1.0, %v2939_v2  ;;  %vm1777_vm12 = vcmp.eq.s32.totalorder %v3410_v44, %v3419_v4  ;;  %v1760_v12 = vadd.s32 8, %v3410_v44 }
 0x3cc   : > { %1693 = vperm.xlu1 %2862, %v2880_v63   ;;  %2717 = vmatpush3.bf16.msra.mxu0 %v1977_v56  ;;  %v2894_v48 = vpop.eup %2893  ;;  %v1881_v63 = vmul.f32 %v1865_v26, %v1849_v7  ;;  %v2384_v56 = vsel %vm1783_vm15, 1.0, %v2939_v2  ;;  %vm1780_vm11 = vcmp.eq.s32.totalorder %v1762_v61, %v3419_v4  ;;  %v1844_v26 = vsel %vm1828_vm10, 1.0, %v2939_v2 }
 0x3cd   : > { %1688 = vperm.xlu0 %2861, %v2882_v40   ;;  %v2387_v40 = vsel %vm1786_vm1, 1.0, %v2939_v2  ;;  %v1863_v28 = vsub.f32 1.0, %v2384_v56  ;;  %v2381_v7 = vsel %vm1780_vm11, 1.0, %v2939_v2  ;;  %vm1825_vm13 = vcmp.gt.f32.partialorder %v1742_v14, 0.0 }
 0x3ce   : > { %v1866_v39 = vsub.f32 1.0, %v2387_v40  ;;  %v3478_v36 = vadd.f32 %v2386_v9, %v1881_v63  ;;  %v1860_v22 = vsub.f32 1.0, %v2381_v7  ;;  %v2378_v63 = vsel %vm1777_vm12, 1.0, %v2939_v2 }
 0x3cf   : > { %vm1778_vm14 = vcmp.eq.s32.totalorder %v1760_v12, %v3419_v4 }
 0x3d0   : > { %1703 = vperm.xlu1 %2862, %v2884_v30   ;;  %v1847_v30 = vsel %vm1831_vm0, 1.0, %v2939_v2  ;;  %v1882_v34 = vmul.f32 %v1866_v39, %v1850_v50  ;;  %v1876_v25 = vmul.f32 %v1860_v22, %v1844_v26  ;;  %v1841_v50 = vsel %vm1825_vm13, 1.0, %v2939_v2  ;;  %v1622_v22 = vld [vmem:[#allocation2 + $0x40] sm:$0xff] }
 0x3d1   : > { %1698 = vperm.xlu0 %2861, %v2886_v32   ;;  %v1766_v32 = vadd.s32 56, %v3410_v44  ;;  %v1879_v52 = vmul.f32 %v1863_v28, %v1847_v30 }
 0x3d2   : > { %v3482_v54 = vadd.f32 %v2387_v40, %v1882_v34  ;;  %v3514_v43 = vadd.f32 %v2381_v7, %v1876_v25  ;;  %v1857_v40 = vsub.f32 1.0, %v2378_v63  ;;  %v1616_v34 = vld [vmem:[#allocation2 + $0x58] sm:$0xff] }
 0x3d3   : > { %vm1784_vm5 = vcmp.eq.s32.totalorder %v1766_v32, %v3419_v4 }
 0x3d4   : > { %1713 = vperm.xlu1 %2862, %v2888_v21   ;;  %v2385_v57 = vsel %vm1784_vm5, 1.0, %v2939_v2  ;;  %v1861_v21 = vsub.f32 1.0, %v2382_v16  ;;  %v2086_v15 = vpack.c.bf16 %v3482_v54, %v3478_v36  ;;  %v1873_v28 = vmul.f32 %v1857_v40, %v1841_v50  ;;  %v1625_v40 = vld [vmem:[#allocation2 + $0x38] sm:$0xff]  ;;  %v1624_v50 = vld [vmem:[#allocation2 + $0x10] sm:$0xff] }
 0x3d5   : > { %1708 = vperm.xlu0 %2861, %v2890_v58   ;;  %v1864_v19 = vsub.f32 1.0, %v2385_v57  ;;  %v1764_v58 = vadd.s32 40, %v3410_v44  ;;  %v2379_v44 = vsel %vm1778_vm14, 1.0, %v2939_v2 }
 0x3d6   : > { %v1877_v35 = vmul.f32 %v1861_v21, %v1845_v17  ;;  %v1858_v39 = vsub.f32 1.0, %v2379_v44 }
 0x3d7   : > { %v1880_v10 = vmul.f32 %v1864_v19, %v1848_v38  ;;  %vm1782_vm7 = vcmp.eq.s32.totalorder %v1764_v58, %v3419_v4  ;;  %v3539_v4 = vadd.f32 %v2378_v63, %v1873_v28  ;;  %v1619_v58 = vld [vmem:[#allocation2 + $0x68] sm:$0xff] }
 0x3d8   : > { %1723 = vperm.xlu1 %2862, %v2892_v31   ;;  %v2383_v23 = vsel %vm1782_vm7, 1.0, %v2939_v2  ;;  %v3495_v31 = vadd.f32 %v2384_v56, %v1879_v52  ;;  %v3504_v53 = vadd.f32 %v2382_v16, %v1877_v35  ;;  %v1743_v56 = vld [vmem:[#allocation3 + $0x68] sm:$0xff]  ;;  %v1617_v16 = vld [vmem:[#allocation2 + $0x18] sm:$0xff]  ;;  %v1615_v52 = vld [vmem:[#allocation2] sm:$0xff] }
 0x3d9   : > { %1718 = vperm.xlu0 %2861, %v2894_v48   ;;  %v3497_v37 = vadd.f32 %v2385_v57, %v1880_v10  ;;  %v1862_v41 = vsub.f32 1.0, %v2383_v23  ;;  %v1859_v48 = vsub.f32 1.0, %v2380_v20  ;;  %vm1826_vm15 = vcmp.gt.f32.partialorder %v1743_v56, 0.0  ;;  %v1618_v10 = vld [vmem:[#allocation2 + $0x50] sm:$0xff] }
 0x3da   : > { %v1842_v62 = vsel %vm1826_vm15, 1.0, %v2939_v2  ;;  %v1614_v2 = vld [vmem:[#allocation2 + $0x30] sm:$0xff] }
 0x3db   : > { %v2085_v6 = vpack.c.bf16 %v3497_v37, %v3495_v31  ;;  %v1878_v49 = vmul.f32 %v1862_v41, %v1846_v29  ;;  %v1875_v55 = vmul.f32 %v1859_v48, %v1843_v0  ;;  %v1874_v51 = vmul.f32 %v1858_v39, %v1842_v62  ;;  %v1621_v41 = vld [vmem:[#allocation2 + $0x48] sm:$0xff] }
 0x3dc   : > { %v1620_v48 = vld [vmem:[#allocation2 + $0x8] sm:$0xff] }
 0x3dd   : > { %v3506_v9 = vadd.f32 %v2383_v23, %v1878_v49  ;;  %v3512_v42 = vadd.f32 %v2380_v20, %v1875_v55  ;;  %v3543_v30 = vadd.f32 %v2379_v44, %v1874_v51  ;;  %v1623_v55 = vld [vmem:[#allocation2 + $0x20] sm:$0xff] }
 0x3df   : > { %v2084_v18 = vpack.c.bf16 %v3506_v9, %v3504_v53  ;;  %v2083_v5 = vpack.c.bf16 %v3514_v43, %v3512_v42 }
 0x3f8   : > { %1933 = vadd.xlane.f32.xlu0 %v3434_v1 }
 0x3fc   : > { %1935 = vadd.xlane.f32.xlu1 %v3439_v59  ;;  %1929 = vadd.xlane.f32.xlu0 %v3449_v27 }
 0x400   : > { %1925 = vadd.xlane.f32.xlu1 %v3460_v45  ;;  %1931 = vadd.xlane.f32.xlu0 %v3454_v60 }
 0x404   : > { %1921 = vadd.xlane.f32.xlu1 %v3478_v36  ;;  %1927 = vadd.xlane.f32.xlu0 %v3469_v11 }
 0x408   : > { %1917 = vadd.xlane.f32.xlu1 %v3495_v31  ;;  %1923 = vadd.xlane.f32.xlu0 %v3482_v54  ;;  %v2394_v31 = vld [vmem:[%s3690_s6] ss:$0 sm:$0xff] }
 0x40c   : > { %1913 = vadd.xlane.f32.xlu1 %v3504_v53  ;;  %1919 = vadd.xlane.f32.xlu0 %v3497_v37 }
 0x410   : > { %1909 = vadd.xlane.f32.xlu1 %v3512_v42  ;;  %1915 = vadd.xlane.f32.xlu0 %v3506_v9 }
 0x414   : > { %1905 = vadd.xlane.f32.xlu1 %v3539_v4  ;;  %1911 = vadd.xlane.f32.xlu0 %v3514_v43 }
 0x418   : > { %1907 = vadd.xlane.f32.xlu0 %v3543_v30 }
 0x437   : > { %v1659_v32 = vpop.permute.xlu1 %1658 }
 0x438   : > { %v1649_v8 = vpop.permute.xlu0 %1648  ;;  %v1728_v38 = vmul.f32 %v1659_v32, %v1616_v34  ;;  %v1627_v32 = vld [vmem:[#allocation2 + $0x70] sm:$0xff] }
 0x439   : > { %v1726_v19 = vmul.f32 %v1649_v8, %v1614_v2  ;;  %v1626_v8 = vld [vmem:[#allocation2 + $0x60] sm:$0xff] }
 0x43b   : > { %v1664_v57 = vpop.permute.xlu1 %1663 }
 0x43c   : > { %v1729_v24 = vmul.f32 %v1664_v57, %v1617_v16  ;;  %v1654_v21 = vpop.permute.xlu0 %1653 }
 0x43d   : > { %v1727_v3 = vmul.f32 %v1654_v21, %v1615_v52 }
 0x43e   : > { %v1954_v17 = vpack.c.bf16 %v1729_v24, %v1728_v38  ;;  %v1629_v38 = vld [vmem:[#allocation2 + $0x28] sm:$0xff]  ;;  %v1628_v24 = vld [vmem:[#allocation2 + $0x78] sm:$0xff] }
 0x43f   : > { %v1674_v20 = vpop.permute.xlu1 %1673  ;;  %v1953_v13 = vpack.c.bf16 %v1727_v3, %v1726_v19 }
 0x440   : > { %v1731_v23 = vmul.f32 %v1674_v20, %v1619_v58  ;;  %v1669_v29 = vpop.permute.xlu0 %1668  ;;  %v2082_v20 = vpack.c.bf16 %v3543_v30, %v3539_v4 }
 0x441   : > { %v1730_v35 = vmul.f32 %v1669_v29, %v1618_v10  ;;  %2718 = vmatprep.mubr.bf16.mxu0 %v1953_v13 }
 0x442   : > { %2719 = vmatmul.mubr.bf16.vlgmr.msra.gmra.mxu0 %v1954_v17  ;;  %2750 = vmatprep.mubr.bf16.mxu1 %v2082_v20 }
 0x443   : > { %v1955_v61 = vpack.c.bf16 %v1731_v23, %v1730_v35  ;;  %v1684_v0 = vpop.permute.xlu1 %1683 }
 0x444   : > { %v1733_v49 = vmul.f32 %v1684_v0, %v1621_v41  ;;  %v1679_v7 = vpop.permute.xlu0 %1678 }
 0x445   : > { %v1732_v26 = vmul.f32 %v1679_v7, %v1620_v48  ;;  %2722 = vmatprep.mubr.bf16.mxu0 %v1955_v61 }
 0x447   : > { %v1956_v25 = vpack.c.bf16 %v1733_v49, %v1732_v26  ;;  %v1694_v12 = vpop.permute.xlu1 %1693 }
 0x448   : > { %v1735_v14 = vmul.f32 %v1694_v12, %v1623_v55  ;;  %v1689_v63 = vpop.permute.xlu0 %1688 }
 0x449   : > { %v1734_v56 = vmul.f32 %v1689_v63, %v1622_v22 }
 0x44a   : > { %2723 = vmatmul.mubr.bf16.gmra.mxu0 %v1956_v25 }
 0x44b   : > { %v1957_v44 = vpack.c.bf16 %v1735_v14, %v1734_v56  ;;  %v1704_v28 = vpop.permute.xlu1 %1703 }
 0x44c   : > { %v1737_v39 = vmul.f32 %v1704_v28, %v1625_v40  ;;  %v1699_v62 = vpop.permute.xlu0 %1698 }
 0x44d   : > { %v1736_v51 = vmul.f32 %v1699_v62, %v1624_v50  ;;  %2726 = vmatprep.mubr.bf16.mxu0 %v1957_v44 }
 0x44f   : > { %v1958_v34 = vpack.c.bf16 %v1737_v39, %v1736_v51  ;;  %v1714_v16 = vpop.permute.xlu1 %1713 }
 0x450   : > { %v1739_v2 = vmul.f32 %v1714_v16, %v1627_v32  ;;  %v1709_v52 = vpop.permute.xlu0 %1708 }
 0x451   : > { %v1738_v57 = vmul.f32 %v1709_v52, %v1626_v8 }
 0x452   : > { %2727 = vmatmul.mubr.bf16.gmra.mxu0 %v1958_v34 }
 0x453   : > { %v1959_v21 = vpack.c.bf16 %v1739_v2, %v1738_v57  ;;  %v1724_v19 = vpop.permute.xlu1 %1723 }
 0x454   : > { %v1741_v3 = vmul.f32 %v1724_v19, %v1629_v38  ;;  %v1719_v58 = vpop.permute.xlu0 %1718 }
 0x455   : > { %v1740_v17 = vmul.f32 %v1719_v58, %v1628_v24  ;;  %2730 = vmatprep.mubr.bf16.mxu0 %v1959_v21 }
 0x457   : > { %v1960_v10 = vpack.c.bf16 %v1741_v3, %v1740_v17 }
 0x45a   : > { %2731 = vmatmul.mubr.bf16.gmra.mxu0 %v1960_v10 }
 0x481   : > { %v1934_v13 = vpop.xlane.xlu0 %1933 }
 0x482   : > { %2895 = vrsqrt.f32 %v1934_v13 }
 0x485   : > { %v1930_v23 = vpop.xlane.xlu0 %1929  ;;  %v1936_v35 = vpop.xlane.xlu1 %1935 }
 0x486   : > { %2897 = vrsqrt.f32 %v1936_v35 }
 0x487   : > { %2899 = vrsqrt.f32 %v1930_v23 }
 0x489   : > { %v1932_v29 = vpop.xlane.xlu0 %1931  ;;  %v1926_v49 = vpop.xlane.xlu1 %1925 }
 0x48a   : > { %2901 = vrsqrt.f32 %v1932_v29 }
 0x48d   : > { %v1928_v61 = vpop.xlane.xlu0 %1927  ;;  %v1922_v4 = vpop.xlane.xlu1 %1921 }
 0x48e   : > { %2903 = vrsqrt.f32 %v1928_v61 }
 0x48f   : > { %2905 = vrsqrt.f32 %v1926_v49  ;;  %v3562_v62 = vpop.eup %2895 }
 0x491   : > { %v1924_v55 = vpop.xlane.xlu0 %1923  ;;  %v1918_v63 = vpop.xlane.xlu1 %1917 }
 0x492   : > { %2907 = vrsqrt.f32 %v1924_v55 }
 0x493   : > { %2909 = vrsqrt.f32 %v1922_v4  ;;  %v3564_v51 = vpop.eup %2897 }
 0x494   : > { %v3566_v8 = vpop.eup %2899 }
 0x495   : > { %v1920_v12 = vpop.xlane.xlu0 %1919  ;;  %v1914_v28 = vpop.xlane.xlu1 %1913 }
 0x496   : > { %2911 = vrsqrt.f32 %v1920_v12 }
 0x497   : > { %2913 = vrsqrt.f32 %v1918_v63  ;;  %v3568_v34 = vpop.eup %2901 }
 0x499   : > { %v1916_v50 = vpop.xlane.xlu0 %1915  ;;  %v1910_v24 = vpop.xlane.xlu1 %1909 }
 0x49a   : > { %2915 = vrsqrt.f32 %v1916_v50 }
 0x49b   : > { %v3572_v38 = vpop.eup %2903  ;;  %2917 = vrsqrt.f32 %v1914_v28 }
 0x49c   : > { %v3576_v17 = vpop.eup %2905 }
 0x49d   : > { %v1912_v16 = vpop.xlane.xlu0 %1911  ;;  %v1906_v61 = vpop.xlane.xlu1 %1905 }
 0x49e   : > { %2919 = vrsqrt.f32 %v1912_v16 }
 0x49f   : > { %v3579_v13 = vpop.eup %2907  ;;  %2921 = vrsqrt.f32 %v1910_v24 }
 0x4a0   : > { %v3582_v35 = vpop.eup %2909 }
 0x4a1   : > { %v1908_v23 = vpop.xlane.xlu0 %1907 }
 0x4a2   : > { %2923 = vrsqrt.f32 %v1908_v23 }
 0x4a3   : > { %v3585_v4 = vpop.eup %2911  ;;  %2925 = vrsqrt.f32 %v1906_v61 }
 0x4a4   : > { %v2914_v63 = vpop.eup %2913 }
 0x502   : > { %v3548_v41 = vpop.f32.mrf.mxu0 }
 0x504   : > { %v3550_v48 = vpop.f32.mrf.mxu0 }
 0x506   : > { %v3552_v0 = vpop.f32.mrf.mxu0 }
 0x508   : > { %v3554_v7 = vpop.f32.mrf.mxu0 }
 0x50a   : > { %v3556_v26 = vpop.f32.mrf.mxu0 }
 0x50b   : > { %v2096_v28 = vmul.f32 %v2914_v63, %v3556_v26 }
 0x50c   : > { %v3558_v22 = vpop.f32.mrf.mxu0 }
 0x50e   : > { %v2725_v30 = vpop.f32.mrf.mxu0 }
 0x510   : > { %v3560_v25 = vpop.f32.mrf.mxu0 }
 0x512   : > { %v2728_v14 = vpop.f32.mrf.mxu0 }
 0x513   : > { %v2100_v29 = vmul.f32 %v3576_v17, %v2728_v14  ;;  %v3589_v14 = vpop.eup %2915 }
 0x514   : > { %v2051_v56 = vpop.f32.mrf.mxu0 }
 0x515   : > { %v2098_v12 = vmul.f32 %v3582_v35, %v2051_v56 }
 0x516   : > { %v2729_v40 = vpop.f32.mrf.mxu0 }
 0x517   : > { %v2101_v10 = vmul.f32 %v3572_v38, %v2729_v40  ;;  %v2097_v40 = vmul.f32 %v3585_v4, %v2725_v30 }
 0x518   : > { %v2054_v44 = vpop.f32.mrf.mxu0 }
 0x519   : > { %v2111_v49 = vpack.c.bf16 %v2101_v10, %v2100_v29  ;;  %v2099_v55 = vmul.f32 %v3579_v13, %v2054_v44  ;;  %v2095_v44 = vmul.f32 %v3589_v14, %v3560_v25 }
 0x51a   : > { %v2732_v39 = vpop.f32.mrf.mxu0 }
 0x51b   : > { %v2104_v52 = vmul.f32 %v3562_v62, %v2732_v39  ;;  %v2110_v50 = vpack.c.bf16 %v2099_v55, %v2098_v12  ;;  %v2918_v39 = vpop.eup %2917 }
 0x51c   : > { %v2067_v32 = vpop.f32.mrf.mxu0  ;;  %v2920_v16 = vpop.eup %2919  ;;  %v2094_v56 = vmul.f32 %v2918_v39, %v3558_v22 }
 0x51d   : > { %v2102_v19 = vmul.f32 %v3566_v8, %v2067_v32  ;;  %v2109_v32 = vpack.c.bf16 %v2097_v40, %v2096_v28  ;;  %v2093_v30 = vmul.f32 %v2920_v16, %v3552_v0 }
 0x51e   : > { %v2733_v2 = vpop.f32.mrf.mxu0 }
 0x51f   : > { %v2105_v57 = vmul.f32 %v3564_v51, %v2733_v2  ;;  %v2922_v2 = vpop.eup %2921 }
 0x520   : > { %v2070_v21 = vpop.f32.mrf.mxu0  ;;  %v2092_v24 = vmul.f32 %v2922_v2, %v3548_v41 }
 0x521   : > { %v2103_v3 = vmul.f32 %v3568_v34, %v2070_v21  ;;  %v2113_v58 = vpack.c.bf16 %v2105_v57, %v2104_v52  ;;  %v2108_v52 = vpack.c.bf16 %v2095_v44, %v2094_v56  ;;  %v2924_v57 = vpop.eup %2923 }
 0x522   : > { %v2926_v26 = vpop.eup %2925  ;;  %v2107_v21 = vpack.c.bf16 %v2093_v30, %v2092_v24 }
 0x523   : > { %v2112_v20 = vpack.c.bf16 %v2103_v3, %v2102_v19  ;;  %2734 = vmatprep.subr.bf16.mxu1 %v2113_v58  ;;  %v2091_v19 = vmul.f32 %v2924_v57, %v3554_v7  ;;  %v2090_v25 = vmul.f32 %v2926_v26, %v3550_v48 }
 0x524   : > { %2735 = vmatpush3.bf16.msra.mxu1 %v2113_v58 }
 0x525   : > { %2736 = vmatprep.subr.bf16.mxu1 %v2112_v20  ;;  %v2106_v3 = vpack.c.bf16 %v2091_v19, %v2090_v25 }
 0x528   : > { %2737 = vmatpush3.bf16.msra.mxu1 %v2112_v20 }
 0x529   : > { %2738 = vmatprep.subr.bf16.mxu1 %v2111_v49 }
 0x52c   : > { %2739 = vmatpush3.bf16.msra.mxu1 %v2111_v49 }
 0x52d   : > { %2740 = vmatprep.subr.bf16.mxu1 %v2110_v50 }
 0x530   : > { %2741 = vmatpush3.bf16.msra.mxu1 %v2110_v50 }
 0x531   : > { %2742 = vmatprep.subr.bf16.mxu1 %v2109_v32 }
 0x534   : > { %2743 = vmatpush3.bf16.msra.mxu1 %v2109_v32 }
 0x535   : > { %2744 = vmatprep.subr.bf16.mxu1 %v2108_v52 }
 0x538   : > { %2745 = vmatpush3.bf16.msra.mxu1 %v2108_v52 }
 0x539   : > { %2746 = vmatprep.subr.bf16.mxu1 %v2107_v21 }
 0x53c   : > { %2747 = vmatpush3.bf16.msra.mxu1 %v2107_v21 }
 0x53d   : > { %2748 = vmatprep.subr.bf16.mxu1 %v2106_v3 }
 0x540   : > { %2749 = vmatpush3.bf16.msra.mxu1 %v2106_v3 }
 0x543   : > { %2751 = vmatmul.mubr.bf16.vlgmr.msra.gmra.mxu1 %v2083_v5 }
 0x544   : > { %2754 = vmatprep.mubr.bf16.mxu1 %v2084_v18 }
 0x54b   : > { %2755 = vmatmul.mubr.bf16.gmra.mxu1 %v2085_v6 }
 0x54c   : > { %2758 = vmatprep.mubr.bf16.mxu1 %v2086_v15 }
 0x553   : > { %2759 = vmatmul.mubr.bf16.gmra.mxu1 %v2087_v33 }
 0x554   : > { %2762 = vmatprep.mubr.bf16.mxu1 %v2088_v46 }
 0x55b   : > { %2763 = vmatmul.mubr.bf16.gmra.mxu1 %v2089_v47 }
 0x603   : > { %v2752_v53 = vpop.f32.mrf.mxu1 }
 0x604   : > { %v2213_v37 = vmul.f32 %v2922_v2, %v2752_v53 }
 0x605   : > { %v2148_v36 = vpop.f32.mrf.mxu1 }
 0x606   : > { %v2236_v54 = vadd.f32 %v2394_v31, %v2213_v37  ;;  %v2211_v15 = vmul.f32 %v2926_v26, %v2148_v36 }
 0x607   : > { %v2753_v6 = vpop.f32.mrf.mxu1 }
 0x608   : > { %2252 = vst [vmem:[%s3691_s7 + $0x10] sm:$0xff] %v2236_v54  ;;  %v2234_v27 = vadd.f32 %v2394_v31, %v2211_v15  ;;  %v2214_v60 = vmul.f32 %v2920_v16, %v2753_v6 }
 0x609   : > { %v2151_v45 = vpop.f32.mrf.mxu1 }
 0x60a   : > { %2250 = vst [vmem:[%s3691_s7] sm:$0xff] %v2234_v27  ;;  %v2237_v1 = vadd.f32 %v2394_v31, %v2214_v60  ;;  %v2212_v59 = vmul.f32 %v2924_v57, %v2151_v45 }
 0x60b   : > { %v2756_v47 = vpop.f32.mrf.mxu1 }
 0x60c   : > { %2253 = vst [vmem:[%s3691_s7 + $0x18] sm:$0xff] %v2237_v1  ;;  %v2235_v46 = vadd.f32 %v2394_v31, %v2212_v59  ;;  %v2217_v11 = vmul.f32 %v2914_v63, %v2756_v47 }
 0x60d   : > { %v2164_v33 = vpop.f32.mrf.mxu1 }
 0x60e   : > { %2251 = vst [vmem:[%s3691_s7 + $0x8] sm:$0xff] %v2235_v46  ;;  %v2240_v9 = vadd.f32 %v2394_v31, %v2217_v11  ;;  %v2215_v18 = vmul.f32 %v2918_v39, %v2164_v33 }
 0x60f   : > { %v2757_v42 = vpop.f32.mrf.mxu1 }
 0x610   : > { %2256 = vst [vmem:[%s3691_s7 + $0x30] sm:$0xff] %v2240_v9  ;;  %v2238_v43 = vadd.f32 %v2394_v31, %v2215_v18  ;;  %v2218_v5 = vmul.f32 %v3585_v4, %v2757_v42 }
 0x611   : > { %v2167_v41 = vpop.f32.mrf.mxu1 }
 0x612   : > { %2254 = vst [vmem:[%s3691_s7 + $0x20] sm:$0xff] %v2238_v43  ;;  %v2241_v48 = vadd.f32 %v2394_v31, %v2218_v5  ;;  %v2216_v0 = vmul.f32 %v3589_v14, %v2167_v41 }
 0x613   : > { %v2760_v7 = vpop.f32.mrf.mxu1 }
 0x614   : > { %2257 = vst [vmem:[%s3691_s7 + $0x38] sm:$0xff] %v2241_v48  ;;  %v2239_v22 = vadd.f32 %v2394_v31, %v2216_v0  ;;  %v2221_v58 = vmul.f32 %v3576_v17, %v2760_v7 }
 0x615   : > { %v2180_v10 = vpop.f32.mrf.mxu1 }
 0x616   : > { %2255 = vst [vmem:[%s3691_s7 + $0x28] sm:$0xff] %v2239_v22  ;;  %v2244_v20 = vadd.f32 %v2394_v31, %v2221_v58  ;;  %v2219_v23 = vmul.f32 %v3582_v35, %v2180_v10 }
 0x617   : > { %v2761_v29 = vpop.f32.mrf.mxu1 }
 0x618   : > { %2260 = vst [vmem:[%s3691_s7 + $0x50] sm:$0xff] %v2244_v20  ;;  %v2242_v61 = vadd.f32 %v2394_v31, %v2219_v23  ;;  %v2222_v49 = vmul.f32 %v3572_v38, %v2761_v29 }
 0x619   : > { %v2183_v55 = vpop.f32.mrf.mxu1 }
 0x61a   : > { %2258 = vst [vmem:[%s3691_s7 + $0x40] sm:$0xff] %v2242_v61  ;;  %v2245_v17 = vadd.f32 %v2394_v31, %v2222_v49  ;;  %v2220_v4 = vmul.f32 %v3579_v13, %v2183_v55 }
 0x61b   : > { %v2764_v12 = vpop.f32.mrf.mxu1 }
 0x61c   : > { %2261 = vst [vmem:[%s3691_s7 + $0x58] sm:$0xff] %v2245_v17  ;;  %v2243_v35 = vadd.f32 %v2394_v31, %v2220_v4  ;;  %v2225_v63 = vmul.f32 %v3562_v62, %v2764_v12 }
 0x61d   : > { %v2196_v40 = vpop.f32.mrf.mxu1 }
 0x61e   : > { %2259 = vst [vmem:[%s3691_s7 + $0x48] sm:$0xff] %v2243_v35  ;;  %v2248_v38 = vadd.f32 %v2394_v31, %v2225_v63  ;;  %v2223_v50 = vmul.f32 %v3566_v8, %v2196_v40 }
 0x61f   : > { %v2765_v14 = vpop.f32.mrf.mxu1 }
 0x620   : > { %2264 = vst [vmem:[%s3691_s7 + $0x70] sm:$0xff] %v2248_v38  ;;  %v2246_v13 = vadd.f32 %v2394_v31, %v2223_v50  ;;  %v2226_v28 = vmul.f32 %v3564_v51, %v2765_v14 }
 0x621   : > { %v2199_v39 = vpop.f32.mrf.mxu1 }
 0x622   : > { %2262 = vst [vmem:[%s3691_s7 + $0x60] sm:$0xff] %v2246_v13  ;;  %v2249_v62 = vadd.f32 %v2394_v31, %v2226_v28  ;;  %v2224_v32 = vmul.f32 %v3568_v34, %v2199_v39 }
 0x624   : > { %2265 = vst [vmem:[%s3691_s7 + $0x78] sm:$0xff] %v2249_v62  ;;  %v2247_v8 = vadd.f32 %v2394_v31, %v2224_v32 }
 0x626   : > { %2263 = vst [vmem:[%s3691_s7 + $0x68] sm:$0xff] %v2247_v8 }
 0x627 PF: > { %s17_s24 = sadd.s32 1, %s2933_s24  }
 0x628   : > { %p14_p6 = scmp.ge.s32.totalorder %s17_s24, 4  }
 0x62a   :  { %16 = sbr.rel (!%p14_p6) target bundleno = 1 (0x1), region = 86 }

</bundles_post_ra>
